<compile_context>
chip_gen: v7x
topology: tpu7x:2x2x1
jax: 0.10.0
libtpu: 0.0.40
codegen_flags: <defaults>
</compile_context>

<pallas_src>
import functools

import jax
import jax.numpy as jnp
from jax.experimental import pallas as pl
from jax.experimental.pallas import tpu as pltpu


# ----------------------------- in-kernel helpers -----------------------------

def _layer_norm(x, gamma, beta, eps=1e-6):
    # x: (L, D); gamma/beta: (1, D)  -> PyTorch nn.LayerNorm(d_model, eps=1e-6)
    mean = jnp.mean(x, axis=-1, keepdims=True)
    var = jnp.mean((x - mean) ** 2, axis=-1, keepdims=True)
    return (x - mean) * jax.lax.rsqrt(var + eps) * gamma + beta


def _mha_block(x_q, x_kv, w_qkv, w_fc, ln, attn_ref, *,
               shared_kv, n_head, d_k, d_v, compute_dtype):
    """One MultiHeadAttention block for a single batch element.

    x_q: (Lq, D) f32, x_kv: (Lk, D) f32.
    w_qkv: (D, H*d_k + H*d_k + H*d_v)  -- [Wq*(1/sqrt(dk)) | Wk | Wv], compute_dtype.
    w_fc:  (H*d_v, D) compute_dtype.
    ln:    (2, D) f32  -- [gamma; beta].
    attn_ref: output ref with block (1, H, Lq, Lk); probs written per head.
    Returns y (Lq, D) f32."""
    cd = compute_dtype
    hk = n_head * d_k
    residual = x_q

    xq_c = x_q.astype(cd)
    if shared_kv:
        # Self-attention: one lane-packed projection matmul for Q, K and V.
        proj = jnp.dot(xq_c, w_qkv, preferred_element_type=jnp.float32)      # (Lq, 2hk+hv)
        q_all = proj[:, :hk]
        k_all = proj[:, hk:2 * hk]
        v_all = proj[:, 2 * hk:]
    else:
        # Enc-dec attention: Q from decoder stream, K/V from encoder output.
        xkv_c = x_kv.astype(cd)
        q_all = jnp.dot(xq_c, w_qkv[:, :hk], preferred_element_type=jnp.float32)
        kv = jnp.dot(xkv_c, w_qkv[:, hk:], preferred_element_type=jnp.float32)
        k_all = kv[:, :hk]
        v_all = kv[:, hk:]

    # Per-head scores / softmax / PV; probs go straight to the output ref.
    o_heads = []
    for h in range(n_head):
        q_h = q_all[:, h * d_k:(h + 1) * d_k].astype(cd)
        k_h = k_all[:, h * d_k:(h + 1) * d_k].astype(cd)
        v_h = v_all[:, h * d_v:(h + 1) * d_v].astype(cd)

        s = jnp.einsum("qd,kd->qk", q_h, k_h,
                       preferred_element_type=jnp.float32)                   # (Lq, Lk)
        s = s - jnp.max(s, axis=-1, keepdims=True)
        e = jnp.exp(s)
        # approx=False keeps the exact-f32 verification at 1e-4; flip to approx=True
        # (EUP vrcp, essentially free) once the tolerance is loosened.
        p = e * pl.reciprocal(jnp.sum(e, axis=-1, keepdims=True), approx=False)

        attn_ref[0, h] = p.astype(attn_ref.dtype)
        o_heads.append(jnp.dot(p.astype(cd), v_h,
                               preferred_element_type=jnp.float32))          # (Lq, d_v)

    o = jnp.concatenate(o_heads, axis=-1)                                    # (Lq, H*d_v)
    # Single full-depth output projection (K = H*d_v), then residual + LayerNorm (f32).
    y = jnp.dot(o.astype(cd), w_fc, preferred_element_type=jnp.float32) + residual
    return _layer_norm(y, ln[0:1], ln[1:2])


def _ffn_block(x, w1, b1, w2, misc, *, compute_dtype):
    # misc: (3, D) f32 = [b2; gamma; beta]
    cd = compute_dtype
    residual = x
    h = jnp.dot(x.astype(cd), w1, preferred_element_type=jnp.float32) + b1
    h = jnp.maximum(h, 0.0)                                                  # ReLU
    y = jnp.dot(h.astype(cd), w2, preferred_element_type=jnp.float32) + misc[0:1]
    y = y + residual
    return _layer_norm(y, misc[1:2], misc[2:3])


# ----------------------------- fused DecoderLayer kernel -----------------------------

def decoder_layer_kernel(dec_ref, enc_ref,
                         s_qkv, s_fc, s_ln,
                         e_qkv, e_fc, e_ln,
                         f_w1, f_b1, f_w2, f_misc,
                         out_ref, slf_attn_ref, enc_attn_ref,
                         *, n_head, d_k, d_v, compute_dtype):
    x_dec = dec_ref[0].astype(jnp.float32)                                   # (L_dec, D)
    x_enc = enc_ref[0].astype(jnp.float32)                                   # (L_enc, D)

    # 1) self-attention (+ residual + LayerNorm)
    y = _mha_block(x_dec, x_dec, s_qkv[...], s_fc[...], s_ln[...], slf_attn_ref,
                   shared_kv=True, n_head=n_head, d_k=d_k, d_v=d_v,
                   compute_dtype=compute_dtype)
    # 2) encoder-decoder attention (+ residual + LayerNorm)
    y = _mha_block(y, x_enc, e_qkv[...], e_fc[...], e_ln[...], enc_attn_ref,
                   shared_kv=False, n_head=n_head, d_k=d_k, d_v=d_v,
                   compute_dtype=compute_dtype)
    # 3) position-wise FFN (+ residual + LayerNorm)
    y = _ffn_block(y, f_w1[...], f_b1[...], f_w2[...], f_misc[...],
                   compute_dtype=compute_dtype)

    out_ref[0] = y.astype(out_ref.dtype)


def decoder_layer(params, dec_input, enc_output, *, n_head, d_k, d_v,
                  compute_dtype=jnp.float32, attn_dtype=jnp.float32):
    """dec_input: (B, L_dec, D); enc_output: (B, L_enc, D).
    Returns (dec_out (B,L_dec,D), slf_attn (B,H,L_dec,L_dec), enc_attn (B,H,L_dec,L_enc))."""
    B, Lq, D = dec_input.shape
    Lk = enc_output.shape[1]

    # One-time wrapper-side weight packing (in a real deployment these slabs would be
    # stored in this layout at init time).  Keeps the original (D, H*d) lane-packed
    # layout and folds 1/sqrt(d_k) into Wq.
    def mha_slabs(p):
        wq, wk, wv, wo, g, b = p
        qkv = jnp.concatenate([wq * (1.0 / (d_k ** 0.5)), wk, wv],
                              axis=1).astype(compute_dtype)                  # (D, 2hk+hv)
        fc = wo.astype(compute_dtype)                                        # (hv, D)
        ln = jnp.concatenate([g, b], axis=0)                                 # (2, D) f32
        return qkv, fc, ln

    s_qkv, s_fc, s_ln = mha_slabs(params["slf"])
    e_qkv, e_fc, e_ln = mha_slabs(params["enc"])
    w1, b1, w2, b2, fg, fb = params["ffn"]
    f_w1 = w1.astype(compute_dtype)
    f_b1 = b1                                                                # (1, d_inner) f32
    f_w2 = w2.astype(compute_dtype)
    f_misc = jnp.concatenate([b2, fg, fb], axis=0)                           # (3, D) f32

    weights = [s_qkv, s_fc, s_ln, e_qkv, e_fc, e_ln, f_w1, f_b1, f_w2, f_misc]

    def full_spec(arr):
        nd = arr.ndim
        # Grid-invariant weight block (whole array every step).
        # TODO(synk): at realistic sizes mark these pipeline_mode=pl.Buffered(1) so they
        #             are not double-buffered (critical for v7x's 64 MiB VMEM).
        return pl.BlockSpec(arr.shape, lambda b: (0,) * nd)

    kernel = functools.partial(decoder_layer_kernel, n_head=n_head, d_k=d_k, d_v=d_v,
                               compute_dtype=compute_dtype)

    dec_out, slf_attn, enc_attn = pl.pallas_call(
        kernel,
        out_shape=(
            jax.ShapeDtypeStruct((B, Lq, D), dec_input.dtype),
            jax.ShapeDtypeStruct((B, n_head, Lq, Lq), attn_dtype),
            jax.ShapeDtypeStruct((B, n_head, Lq, Lk), attn_dtype),
        ),
        grid=(B,),
        in_specs=[pl.BlockSpec((1, Lq, D), lambda b: (b, 0, 0)),
                  pl.BlockSpec((1, Lk, D), lambda b: (b, 0, 0))]
                 + [full_spec(w) for w in weights],
        out_specs=(
            pl.BlockSpec((1, Lq, D), lambda b: (b, 0, 0)),
            pl.BlockSpec((1, n_head, Lq, Lq), lambda b: (b, 0, 0, 0)),
            pl.BlockSpec((1, n_head, Lq, Lk), lambda b: (b, 0, 0, 0)),
        ),
        compiler_params=pltpu.CompilerParams(dimension_semantics=("parallel",)),
    )(dec_input, enc_output, *weights)
    return dec_out, slf_attn, enc_attn


# ----------------------------- parameters -----------------------------

def init_decoder_layer_params(key, d_model, d_inner, n_head, d_k, d_v):
    ks = jax.random.split(key, 12)
    scale = 0.02

    def mha_params(k4):
        k0, k1, k2, k3 = k4
        return (
            scale * jax.random.normal(k0, (d_model, n_head * d_k), jnp.float32),  # w_qs
            scale * jax.random.normal(k1, (d_model, n_head * d_k), jnp.float32),  # w_ks
            scale * jax.random.normal(k2, (d_model, n_head * d_v), jnp.float32),  # w_vs
            scale * jax.random.normal(k3, (n_head * d_v, d_model), jnp.float32),  # fc
            jnp.ones((1, d_model), jnp.float32),                                  # LN gamma
            jnp.zeros((1, d_model), jnp.float32),                                 # LN beta
        )

    slf = mha_params(ks[0:4])
    enc = mha_params(ks[4:8])
    ffn = (
        scale * jax.random.normal(ks[8], (d_model, d_inner), jnp.float32),        # w_1
        scale * jax.random.normal(ks[9], (1, d_inner), jnp.float32),              # b_1
        scale * jax.random.normal(ks[10], (d_inner, d_model), jnp.float32),       # w_2
        scale * jax.random.normal(ks[11], (1, d_model), jnp.float32),             # b_2
        jnp.ones((1, d_model), jnp.float32),
        jnp.zeros((1, d_model), jnp.float32),
    )
    return {"slf": slf, "enc": enc, "ffn": ffn}


# ----------------------------- pure-JAX reference for verification -----------------------------

def _ref_mha(q, kv, params, n_head, d_k, d_v):
    wq, wk, wv, wo, gamma, beta = params
    B, Lq, D = q.shape
    Lk = kv.shape[1]
    residual = q
    qp = (q @ wq).reshape(B, Lq, n_head, d_k).transpose(0, 2, 1, 3)
    kp = (kv @ wk).reshape(B, Lk, n_head, d_k).transpose(0, 2, 1, 3)
    vp = (kv @ wv).reshape(B, Lk, n_head, d_v).transpose(0, 2, 1, 3)
    attn = jax.nn.softmax(jnp.einsum("bhqd,bhkd->bhqk", qp / (d_k ** 0.5), kp), axis=-1)
    o = jnp.einsum("bhqk,bhkd->bhqd", attn, vp).transpose(0, 2, 1, 3).reshape(B, Lq, -1)
    o = o @ wo + residual
    mean = o.mean(-1, keepdims=True)
    var = ((o - mean) ** 2).mean(-1, keepdims=True)
    o = (o - mean) / jnp.sqrt(var + 1e-6) * gamma[0] + beta[0]
    return o, attn


def _ref_ffn(x, params):
    w1, b1, w2, b2, gamma, beta = params
    y = jnp.maximum(x @ w1 + b1[0], 0.0) @ w2 + b2[0] + x
    mean = y.mean(-1, keepdims=True)
    var = ((y - mean) ** 2).mean(-1, keepdims=True)
    return (y - mean) / jnp.sqrt(var + 1e-6) * gamma[0] + beta[0]


def _ref_decoder_layer(params, dec_input, enc_output, n_head, d_k, d_v):
    o, a1 = _ref_mha(dec_input, dec_input, params["slf"], n_head, d_k, d_v)
    o, a2 = _ref_mha(o, enc_output, params["enc"], n_head, d_k, d_v)
    o = _ref_ffn(o, params["ffn"])
    return o, a1, a2


# ----------------------------- main -----------------------------

if __name__ == "__main__":
    B, L_dec, L_enc = 2, 8, 8
    d_model, d_inner, n_head, d_k, d_v = 32, 64, 4, 8, 8

    key = jax.random.PRNGKey(0)
    k_params, k_dec, k_enc = jax.random.split(key, 3)

    params = init_decoder_layer_params(k_params, d_model, d_inner, n_head, d_k, d_v)
    dec_input = jax.random.normal(k_dec, (B, L_dec, d_model), jnp.float32)
    enc_output = jax.random.normal(k_enc, (B, L_enc, d_model), jnp.float32)

    ref_out, ref_slf, ref_enc = _ref_decoder_layer(
        params, dec_input, enc_output, n_head, d_k, d_v)

    # --- exact-math path (f32 MXU operands): strict 1e-4 check ---
    dec_out, slf_attn, enc_attn = decoder_layer(
        params, dec_input, enc_output, n_head=n_head, d_k=d_k, d_v=d_v,
        compute_dtype=jnp.float32, attn_dtype=jnp.float32)
    jax.block_until_ready((dec_out, slf_attn, enc_attn))

    assert dec_out.shape == (B, L_dec, d_model)
    assert slf_attn.shape == (B, n_head, L_dec, L_dec)
    assert enc_attn.shape == (B, n_head, L_dec, L_enc)
    assert jnp.allclose(dec_out, ref_out, rtol=1e-4, atol=1e-4)
    assert jnp.allclose(slf_attn, ref_slf, rtol=1e-4, atol=1e-4)
    assert jnp.allclose(enc_attn, ref_enc, rtol=1e-4, atol=1e-4)

    # --- production path (bf16 MXU operands / bf16 prob outputs, f32 VPU math) ---
    dec_out16, slf16, enc16 = decoder_layer(
        params, dec_input, enc_output, n_head=n_head, d_k=d_k, d_v=d_v,
        compute_dtype=jnp.bfloat16, attn_dtype=jnp.bfloat16)
    jax.block_until_ready((dec_out16, slf16, enc16))

    assert jnp.allclose(dec_out16, ref_out, rtol=3e-2, atol=3e-2)
    assert jnp.allclose(slf16.astype(jnp.float32), ref_slf, rtol=3e-2, atol=3e-2)
    assert jnp.allclose(enc16.astype(jnp.float32), ref_enc, rtol=3e-2, atol=3e-2)

    print("KERNEL_OK")
</pallas_src>

<mosaic_0001>
module attributes {stable_mosaic.version = 11 : i64} {
  func.func @decoder_layer_kernel(%arg0: i32, %arg1: memref<1x8x32xf32, #tpu.memory_space<vmem>>, %arg2: memref<1x8x32xf32, #tpu.memory_space<vmem>>, %arg3: memref<32x96xf32, #tpu.memory_space<vmem>>, %arg4: memref<32x32xf32, #tpu.memory_space<vmem>>, %arg5: memref<2x32xf32, #tpu.memory_space<vmem>>, %arg6: memref<32x96xf32, #tpu.memory_space<vmem>>, %arg7: memref<32x32xf32, #tpu.memory_space<vmem>>, %arg8: memref<2x32xf32, #tpu.memory_space<vmem>>, %arg9: memref<32x64xf32, #tpu.memory_space<vmem>>, %arg10: memref<1x64xf32, #tpu.memory_space<vmem>>, %arg11: memref<64x32xf32, #tpu.memory_space<vmem>>, %arg12: memref<3x32xf32, #tpu.memory_space<vmem>>, %arg13: memref<1x8x32xf32, #tpu.memory_space<vmem>>, %arg14: memref<1x4x8x8xf32, #tpu.memory_space<vmem>>, %arg15: memref<1x4x8x8xf32, #tpu.memory_space<vmem>>) attributes {dimension_semantics = [#tpu.dimension_semantics<parallel>], iteration_bounds = array<i64: 2>, scalar_prefetch = 0 : i64, scratch_operands = 0 : i64, tpu.core_type = #tpu.core_type<tc>, window_params = [{transform_indices = @transform_0, window_bounds = array<i64: 1, 8, 32>}, {transform_indices = @transform_1, window_bounds = array<i64: 1, 8, 32>}, {pipeline_mode = #tpu.pipeline_mode<synchronous>, transform_indices = @transform_2, window_bounds = array<i64: 32, 96>}, {pipeline_mode = #tpu.pipeline_mode<synchronous>, transform_indices = @transform_3, window_bounds = array<i64: 32, 32>}, {pipeline_mode = #tpu.pipeline_mode<synchronous>, transform_indices = @transform_4, window_bounds = array<i64: 2, 32>}, {pipeline_mode = #tpu.pipeline_mode<synchronous>, transform_indices = @transform_5, window_bounds = array<i64: 32, 96>}, {pipeline_mode = #tpu.pipeline_mode<synchronous>, transform_indices = @transform_6, window_bounds = array<i64: 32, 32>}, {pipeline_mode = #tpu.pipeline_mode<synchronous>, transform_indices = @transform_7, window_bounds = array<i64: 2, 32>}, {pipeline_mode = #tpu.pipeline_mode<synchronous>, transform_indices = @transform_8, window_bounds = array<i64: 32, 64>}, {pipeline_mode = #tpu.pipeline_mode<synchronous>, transform_indices = @transform_9, window_bounds = array<i64: 1, 64>}, {pipeline_mode = #tpu.pipeline_mode<synchronous>, transform_indices = @transform_10, window_bounds = array<i64: 64, 32>}, {pipeline_mode = #tpu.pipeline_mode<synchronous>, transform_indices = @transform_11, window_bounds = array<i64: 3, 32>}, {transform_indices = @transform_12, window_bounds = array<i64: 1, 8, 32>}, {transform_indices = @transform_13, window_bounds = array<i64: 1, 4, 8, 8>}, {transform_indices = @transform_14, window_bounds = array<i64: 1, 4, 8, 8>}]} {
    %c0 = arith.constant 0 : index
    %c0_0 = arith.constant 0 : index
    %c0_1 = arith.constant 0 : index
    %0 = vector.load %arg1[%c0, %c0_0, %c0_1] : memref<1x8x32xf32, #tpu.memory_space<vmem>>, vector<1x8x32xf32>
    %1 = vector.shape_cast %0 : vector<1x8x32xf32> to vector<8x32xf32>
    %c0_2 = arith.constant 0 : index
    %c0_3 = arith.constant 0 : index
    %c0_4 = arith.constant 0 : index
    %2 = vector.load %arg2[%c0_2, %c0_3, %c0_4] : memref<1x8x32xf32, #tpu.memory_space<vmem>>, vector<1x8x32xf32>
    %3 = vector.shape_cast %2 : vector<1x8x32xf32> to vector<8x32xf32>
    %c0_5 = arith.constant 0 : index
    %c0_6 = arith.constant 0 : index
    %4 = vector.load %arg3[%c0_5, %c0_6] : memref<32x96xf32, #tpu.memory_space<vmem>>, vector<32x96xf32>
    %c0_7 = arith.constant 0 : index
    %c0_8 = arith.constant 0 : index
    %5 = vector.load %arg4[%c0_7, %c0_8] : memref<32x32xf32, #tpu.memory_space<vmem>>, vector<32x32xf32>
    %c0_9 = arith.constant 0 : index
    %c0_10 = arith.constant 0 : index
    %6 = vector.load %arg5[%c0_9, %c0_10] : memref<2x32xf32, #tpu.memory_space<vmem>>, vector<2x32xf32>
    %cst = arith.constant dense<0.000000e+00> : vector<8x96xf32>
    %7 = tpu.matmul %1, %4, %cst {dimension_numbers = #tpu.dot_dimension_numbers<[1], [0], [0], [1], [0, 0, 1, 1], [], []>} : vector<8x32xf32>, vector<32x96xf32>, vector<8x96xf32> -> vector<8x96xf32>
    %8 = vector.extract_strided_slice %7 {offsets = [0, 0], sizes = [8, 32], strides = [1, 1]} : vector<8x96xf32> to vector<8x32xf32>
    %9 = vector.extract_strided_slice %7 {offsets = [0, 32], sizes = [8, 32], strides = [1, 1]} : vector<8x96xf32> to vector<8x32xf32>
    %10 = vector.extract_strided_slice %7 {offsets = [0, 64], sizes = [8, 32], strides = [1, 1]} : vector<8x96xf32> to vector<8x32xf32>
    %11 = vector.extract_strided_slice %8 {offsets = [0, 0], sizes = [8, 8], strides = [1, 1]} : vector<8x32xf32> to vector<8x8xf32>
    %12 = vector.extract_strided_slice %9 {offsets = [0, 0], sizes = [8, 8], strides = [1, 1]} : vector<8x32xf32> to vector<8x8xf32>
    %13 = vector.extract_strided_slice %10 {offsets = [0, 0], sizes = [8, 8], strides = [1, 1]} : vector<8x32xf32> to vector<8x8xf32>
    "tpu.trace_start"() <{level = 10 : i32, message = "qd,kd->qk"}> : () -> ()
    %cst_11 = arith.constant dense<0.000000e+00> : vector<8x8xf32>
    %14 = tpu.matmul %11, %12, %cst_11 {dimension_numbers = #tpu.dot_dimension_numbers<[1], [1], [0], [0], [0, 0, 1, 0], [], []>} : vector<8x8xf32>, vector<8x8xf32>, vector<8x8xf32> -> vector<8x8xf32>
    "tpu.trace_stop"() : () -> ()
    %cst_12 = arith.constant dense<0xFF800000> : vector<8xf32>
    %15 = vector.multi_reduction <maximumf>, %14, %cst_12 [1] : vector<8x8xf32> to vector<8xf32>
    %16 = vector.shape_cast %15 : vector<8xf32> to vector<8x1xf32>
    %17 = vector.broadcast %16 : vector<8x1xf32> to vector<8x8xf32>
    %18 = arith.subf %14, %17 : vector<8x8xf32>
    %19 = math.exp %18 : vector<8x8xf32>
    %cst_13 = arith.constant dense<0.000000e+00> : vector<8xf32>
    %20 = vector.multi_reduction <add>, %19, %cst_13 [1] : vector<8x8xf32> to vector<8xf32>
    %21 = vector.shape_cast %20 : vector<8xf32> to vector<8x1xf32>
    %22 = tpu.reciprocal %21 : vector<8x1xf32> -> vector<8x1xf32>
    %23 = vector.broadcast %22 : vector<8x1xf32> to vector<8x8xf32>
    %24 = arith.mulf %19, %23 : vector<8x8xf32>
    %c0_14 = arith.constant 0 : index
    %c0_15 = arith.constant 0 : index
    %c0_16 = arith.constant 0 : index
    %c0_17 = arith.constant 0 : index
    %25 = vector.load %arg14[%c0_14, %c0_15, %c0_16, %c0_17] : memref<1x4x8x8xf32, #tpu.memory_space<vmem>>, vector<1x1x8x8xf32>
    %26 = vector.shape_cast %25 : vector<1x1x8x8xf32> to vector<8x8xf32>
    %27 = vector.shape_cast %24 : vector<8x8xf32> to vector<1x1x8x8xf32>
    tpu.vector_store %arg14[%c0_14, %c0_15, %c0_16, %c0_17], %27 {strides = array<i32>} : memref<1x4x8x8xf32, #tpu.memory_space<vmem>>, vector<1x1x8x8xf32>,
    %cst_18 = arith.constant dense<0.000000e+00> : vector<8x8xf32>
    %28 = tpu.matmul %24, %13, %cst_18 {dimension_numbers = #tpu.dot_dimension_numbers<[1], [0], [0], [1], [0, 0, 1, 1], [], []>} : vector<8x8xf32>, vector<8x8xf32>, vector<8x8xf32> -> vector<8x8xf32>
    %29 = vector.extract_strided_slice %8 {offsets = [0, 8], sizes = [8, 8], strides = [1, 1]} : vector<8x32xf32> to vector<8x8xf32>
    %30 = vector.extract_strided_slice %9 {offsets = [0, 8], sizes = [8, 8], strides = [1, 1]} : vector<8x32xf32> to vector<8x8xf32>
    %31 = vector.extract_strided_slice %10 {offsets = [0, 8], sizes = [8, 8], strides = [1, 1]} : vector<8x32xf32> to vector<8x8xf32>
    "tpu.trace_start"() <{level = 10 : i32, message = "qd,kd->qk"}> : () -> ()
    %cst_19 = arith.constant dense<0.000000e+00> : vector<8x8xf32>
    %32 = tpu.matmul %29, %30, %cst_19 {dimension_numbers = #tpu.dot_dimension_numbers<[1], [1], [0], [0], [0, 0, 1, 0], [], []>} : vector<8x8xf32>, vector<8x8xf32>, vector<8x8xf32> -> vector<8x8xf32>
    "tpu.trace_stop"() : () -> ()
    %cst_20 = arith.constant dense<0xFF800000> : vector<8xf32>
    %33 = vector.multi_reduction <maximumf>, %32, %cst_20 [1] : vector<8x8xf32> to vector<8xf32>
    %34 = vector.shape_cast %33 : vector<8xf32> to vector<8x1xf32>
    %35 = vector.broadcast %34 : vector<8x1xf32> to vector<8x8xf32>
    %36 = arith.subf %32, %35 : vector<8x8xf32>
    %37 = math.exp %36 : vector<8x8xf32>
    %cst_21 = arith.constant dense<0.000000e+00> : vector<8xf32>
    %38 = vector.multi_reduction <add>, %37, %cst_21 [1] : vector<8x8xf32> to vector<8xf32>
    %39 = vector.shape_cast %38 : vector<8xf32> to vector<8x1xf32>
    %40 = tpu.reciprocal %39 : vector<8x1xf32> -> vector<8x1xf32>
    %41 = vector.broadcast %40 : vector<8x1xf32> to vector<8x8xf32>
    %42 = arith.mulf %37, %41 : vector<8x8xf32>
    %c0_22 = arith.constant 0 : index
    %c1 = arith.constant 1 : index
    %c0_23 = arith.constant 0 : index
    %c0_24 = arith.constant 0 : index
    %43 = vector.load %arg14[%c0_22, %c1, %c0_23, %c0_24] : memref<1x4x8x8xf32, #tpu.memory_space<vmem>>, vector<1x1x8x8xf32>
    %44 = vector.shape_cast %43 : vector<1x1x8x8xf32> to vector<8x8xf32>
    %45 = vector.shape_cast %42 : vector<8x8xf32> to vector<1x1x8x8xf32>
    tpu.vector_store %arg14[%c0_22, %c1, %c0_23, %c0_24], %45 {strides = array<i32>} : memref<1x4x8x8xf32, #tpu.memory_space<vmem>>, vector<1x1x8x8xf32>,
    %cst_25 = arith.constant dense<0.000000e+00> : vector<8x8xf32>
    %46 = tpu.matmul %42, %31, %cst_25 {dimension_numbers = #tpu.dot_dimension_numbers<[1], [0], [0], [1], [0, 0, 1, 1], [], []>} : vector<8x8xf32>, vector<8x8xf32>, vector<8x8xf32> -> vector<8x8xf32>
    %47 = vector.extract_strided_slice %8 {offsets = [0, 16], sizes = [8, 8], strides = [1, 1]} : vector<8x32xf32> to vector<8x8xf32>
    %48 = vector.extract_strided_slice %9 {offsets = [0, 16], sizes = [8, 8], strides = [1, 1]} : vector<8x32xf32> to vector<8x8xf32>
    %49 = vector.extract_strided_slice %10 {offsets = [0, 16], sizes = [8, 8], strides = [1, 1]} : vector<8x32xf32> to vector<8x8xf32>
    "tpu.trace_start"() <{level = 10 : i32, message = "qd,kd->qk"}> : () -> ()
    %cst_26 = arith.constant dense<0.000000e+00> : vector<8x8xf32>
    %50 = tpu.matmul %47, %48, %cst_26 {dimension_numbers = #tpu.dot_dimension_numbers<[1], [1], [0], [0], [0, 0, 1, 0], [], []>} : vector<8x8xf32>, vector<8x8xf32>, vector<8x8xf32> -> vector<8x8xf32>
    "tpu.trace_stop"() : () -> ()
    %cst_27 = arith.constant dense<0xFF800000> : vector<8xf32>
    %51 = vector.multi_reduction <maximumf>, %50, %cst_27 [1] : vector<8x8xf32> to vector<8xf32>
    %52 = vector.shape_cast %51 : vector<8xf32> to vector<8x1xf32>
    %53 = vector.broadcast %52 : vector<8x1xf32> to vector<8x8xf32>
    %54 = arith.subf %50, %53 : vector<8x8xf32>
    %55 = math.exp %54 : vector<8x8xf32>
    %cst_28 = arith.constant dense<0.000000e+00> : vector<8xf32>
    %56 = vector.multi_reduction <add>, %55, %cst_28 [1] : vector<8x8xf32> to vector<8xf32>
    %57 = vector.shape_cast %56 : vector<8xf32> to vector<8x1xf32>
    %58 = tpu.reciprocal %57 : vector<8x1xf32> -> vector<8x1xf32>
    %59 = vector.broadcast %58 : vector<8x1xf32> to vector<8x8xf32>
    %60 = arith.mulf %55, %59 : vector<8x8xf32>
    %c0_29 = arith.constant 0 : index
    %c2 = arith.constant 2 : index
    %c0_30 = arith.constant 0 : index
    %c0_31 = arith.constant 0 : index
    %61 = vector.load %arg14[%c0_29, %c2, %c0_30, %c0_31] : memref<1x4x8x8xf32, #tpu.memory_space<vmem>>, vector<1x1x8x8xf32>
    %62 = vector.shape_cast %61 : vector<1x1x8x8xf32> to vector<8x8xf32>
    %63 = vector.shape_cast %60 : vector<8x8xf32> to vector<1x1x8x8xf32>
    tpu.vector_store %arg14[%c0_29, %c2, %c0_30, %c0_31], %63 {strides = array<i32>} : memref<1x4x8x8xf32, #tpu.memory_space<vmem>>, vector<1x1x8x8xf32>,
    %cst_32 = arith.constant dense<0.000000e+00> : vector<8x8xf32>
    %64 = tpu.matmul %60, %49, %cst_32 {dimension_numbers = #tpu.dot_dimension_numbers<[1], [0], [0], [1], [0, 0, 1, 1], [], []>} : vector<8x8xf32>, vector<8x8xf32>, vector<8x8xf32> -> vector<8x8xf32>
    %65 = vector.extract_strided_slice %8 {offsets = [0, 24], sizes = [8, 8], strides = [1, 1]} : vector<8x32xf32> to vector<8x8xf32>
    %66 = vector.extract_strided_slice %9 {offsets = [0, 24], sizes = [8, 8], strides = [1, 1]} : vector<8x32xf32> to vector<8x8xf32>
    %67 = vector.extract_strided_slice %10 {offsets = [0, 24], sizes = [8, 8], strides = [1, 1]} : vector<8x32xf32> to vector<8x8xf32>
    "tpu.trace_start"() <{level = 10 : i32, message = "qd,kd->qk"}> : () -> ()
    %cst_33 = arith.constant dense<0.000000e+00> : vector<8x8xf32>
    %68 = tpu.matmul %65, %66, %cst_33 {dimension_numbers = #tpu.dot_dimension_numbers<[1], [1], [0], [0], [0, 0, 1, 0], [], []>} : vector<8x8xf32>, vector<8x8xf32>, vector<8x8xf32> -> vector<8x8xf32>
    "tpu.trace_stop"() : () -> ()
    %cst_34 = arith.constant dense<0xFF800000> : vector<8xf32>
    %69 = vector.multi_reduction <maximumf>, %68, %cst_34 [1] : vector<8x8xf32> to vector<8xf32>
    %70 = vector.shape_cast %69 : vector<8xf32> to vector<8x1xf32>
    %71 = vector.broadcast %70 : vector<8x1xf32> to vector<8x8xf32>
    %72 = arith.subf %68, %71 : vector<8x8xf32>
    %73 = math.exp %72 : vector<8x8xf32>
    %cst_35 = arith.constant dense<0.000000e+00> : vector<8xf32>
    %74 = vector.multi_reduction <add>, %73, %cst_35 [1] : vector<8x8xf32> to vector<8xf32>
    %75 = vector.shape_cast %74 : vector<8xf32> to vector<8x1xf32>
    %76 = tpu.reciprocal %75 : vector<8x1xf32> -> vector<8x1xf32>
    %77 = vector.broadcast %76 : vector<8x1xf32> to vector<8x8xf32>
    %78 = arith.mulf %73, %77 : vector<8x8xf32>
    %c0_36 = arith.constant 0 : index
    %c3 = arith.constant 3 : index
    %c0_37 = arith.constant 0 : index
    %c0_38 = arith.constant 0 : index
    %79 = vector.load %arg14[%c0_36, %c3, %c0_37, %c0_38] : memref<1x4x8x8xf32, #tpu.memory_space<vmem>>, vector<1x1x8x8xf32>
    %80 = vector.shape_cast %79 : vector<1x1x8x8xf32> to vector<8x8xf32>
    %81 = vector.shape_cast %78 : vector<8x8xf32> to vector<1x1x8x8xf32>
    tpu.vector_store %arg14[%c0_36, %c3, %c0_37, %c0_38], %81 {strides = array<i32>} : memref<1x4x8x8xf32, #tpu.memory_space<vmem>>, vector<1x1x8x8xf32>,
    %cst_39 = arith.constant dense<0.000000e+00> : vector<8x8xf32>
    %82 = tpu.matmul %78, %67, %cst_39 {dimension_numbers = #tpu.dot_dimension_numbers<[1], [0], [0], [1], [0, 0, 1, 1], [], []>} : vector<8x8xf32>, vector<8x8xf32>, vector<8x8xf32> -> vector<8x8xf32>
    %83 = tpu.concatenate %28, %46, %64, %82 in 1 : vector<8x8xf32>, vector<8x8xf32>, vector<8x8xf32>, vector<8x8xf32> -> vector<8x32xf32>
    %cst_40 = arith.constant dense<0.000000e+00> : vector<8x32xf32>
    %84 = tpu.matmul %83, %5, %cst_40 {dimension_numbers = #tpu.dot_dimension_numbers<[1], [0], [0], [1], [0, 0, 1, 1], [], []>} : vector<8x32xf32>, vector<32x32xf32>, vector<8x32xf32> -> vector<8x32xf32>
    %85 = arith.addf %84, %1 : vector<8x32xf32>
    %86 = vector.extract_strided_slice %6 {offsets = [0, 0], sizes = [1, 32], strides = [1, 1]} : vector<2x32xf32> to vector<1x32xf32>
    %87 = vector.extract_strided_slice %6 {offsets = [1, 0], sizes = [1, 32], strides = [1, 1]} : vector<2x32xf32> to vector<1x32xf32>
    %cst_41 = arith.constant dense<0.000000e+00> : vector<8xf32>
    %88 = vector.multi_reduction <add>, %85, %cst_41 [1] : vector<8x32xf32> to vector<8xf32>
    %89 = vector.shape_cast %88 : vector<8xf32> to vector<8x1xf32>
    %cst_42 = arith.constant 3.200000e+01 : f32
    %90 = vector.broadcast %cst_42 : f32 to vector<8x1xf32>
    %91 = arith.divf %89, %90 : vector<8x1xf32>
    %92 = vector.broadcast %91 : vector<8x1xf32> to vector<8x32xf32>
    %93 = arith.subf %85, %92 : vector<8x32xf32>
    %94 = arith.mulf %93, %93 : vector<8x32xf32>
    %cst_43 = arith.constant dense<0.000000e+00> : vector<8xf32>
    %95 = vector.multi_reduction <add>, %94, %cst_43 [1] : vector<8x32xf32> to vector<8xf32>
    %96 = vector.shape_cast %95 : vector<8xf32> to vector<8x1xf32>
    %cst_44 = arith.constant 3.200000e+01 : f32
    %97 = vector.broadcast %cst_44 : f32 to vector<8x1xf32>
    %98 = arith.divf %96, %97 : vector<8x1xf32>
    %99 = vector.broadcast %91 : vector<8x1xf32> to vector<8x32xf32>
    %100 = arith.subf %85, %99 : vector<8x32xf32>
    %cst_45 = arith.constant 9.99999997E-7 : f32
    %101 = vector.broadcast %cst_45 : f32 to vector<8x1xf32>
    %102 = arith.addf %98, %101 : vector<8x1xf32>
    %103 = math.rsqrt %102 : vector<8x1xf32>
    %104 = vector.broadcast %103 : vector<8x1xf32> to vector<8x32xf32>
    %105 = arith.mulf %100, %104 : vector<8x32xf32>
    %106 = vector.broadcast %86 : vector<1x32xf32> to vector<8x32xf32>
    %107 = arith.mulf %105, %106 : vector<8x32xf32>
    %108 = vector.broadcast %87 : vector<1x32xf32> to vector<8x32xf32>
    %109 = arith.addf %107, %108 : vector<8x32xf32>
    %c0_46 = arith.constant 0 : index
    %c0_47 = arith.constant 0 : index
    %110 = vector.load %arg6[%c0_46, %c0_47] : memref<32x96xf32, #tpu.memory_space<vmem>>, vector<32x96xf32>
    %c0_48 = arith.constant 0 : index
    %c0_49 = arith.constant 0 : index
    %111 = vector.load %arg7[%c0_48, %c0_49] : memref<32x32xf32, #tpu.memory_space<vmem>>, vector<32x32xf32>
    %c0_50 = arith.constant 0 : index
    %c0_51 = arith.constant 0 : index
    %112 = vector.load %arg8[%c0_50, %c0_51] : memref<2x32xf32, #tpu.memory_space<vmem>>, vector<2x32xf32>
    %113 = vector.extract_strided_slice %110 {offsets = [0, 0], sizes = [32, 32], strides = [1, 1]} : vector<32x96xf32> to vector<32x32xf32>
    %cst_52 = arith.constant dense<0.000000e+00> : vector<8x32xf32>
    %114 = tpu.matmul %109, %113, %cst_52 {dimension_numbers = #tpu.dot_dimension_numbers<[1], [0], [0], [1], [0, 0, 1, 1], [], []>} : vector<8x32xf32>, vector<32x32xf32>, vector<8x32xf32> -> vector<8x32xf32>
    %115 = vector.extract_strided_slice %110 {offsets = [0, 32], sizes = [32, 64], strides = [1, 1]} : vector<32x96xf32> to vector<32x64xf32>
    %cst_53 = arith.constant dense<0.000000e+00> : vector<8x64xf32>
    %116 = tpu.matmul %3, %115, %cst_53 {dimension_numbers = #tpu.dot_dimension_numbers<[1], [0], [0], [1], [0, 0, 1, 1], [], []>} : vector<8x32xf32>, vector<32x64xf32>, vector<8x64xf32> -> vector<8x64xf32>
    %117 = vector.extract_strided_slice %116 {offsets = [0, 0], sizes = [8, 32], strides = [1, 1]} : vector<8x64xf32> to vector<8x32xf32>
    %118 = vector.extract_strided_slice %116 {offsets = [0, 32], sizes = [8, 32], strides = [1, 1]} : vector<8x64xf32> to vector<8x32xf32>
    %119 = vector.extract_strided_slice %114 {offsets = [0, 0], sizes = [8, 8], strides = [1, 1]} : vector<8x32xf32> to vector<8x8xf32>
    %120 = vector.extract_strided_slice %117 {offsets = [0, 0], sizes = [8, 8], strides = [1, 1]} : vector<8x32xf32> to vector<8x8xf32>
    %121 = vector.extract_strided_slice %118 {offsets = [0, 0], sizes = [8, 8], strides = [1, 1]} : vector<8x32xf32> to vector<8x8xf32>
    "tpu.trace_start"() <{level = 10 : i32, message = "qd,kd->qk"}> : () -> ()
    %cst_54 = arith.constant dense<0.000000e+00> : vector<8x8xf32>
    %122 = tpu.matmul %119, %120, %cst_54 {dimension_numbers = #tpu.dot_dimension_numbers<[1], [1], [0], [0], [0, 0, 1, 0], [], []>} : vector<8x8xf32>, vector<8x8xf32>, vector<8x8xf32> -> vector<8x8xf32>
    "tpu.trace_stop"() : () -> ()
    %cst_55 = arith.constant dense<0xFF800000> : vector<8xf32>
    %123 = vector.multi_reduction <maximumf>, %122, %cst_55 [1] : vector<8x8xf32> to vector<8xf32>
    %124 = vector.shape_cast %123 : vector<8xf32> to vector<8x1xf32>
    %125 = vector.broadcast %124 : vector<8x1xf32> to vector<8x8xf32>
    %126 = arith.subf %122, %125 : vector<8x8xf32>
    %127 = math.exp %126 : vector<8x8xf32>
    %cst_56 = arith.constant dense<0.000000e+00> : vector<8xf32>
    %128 = vector.multi_reduction <add>, %127, %cst_56 [1] : vector<8x8xf32> to vector<8xf32>
    %129 = vector.shape_cast %128 : vector<8xf32> to vector<8x1xf32>
    %130 = tpu.reciprocal %129 : vector<8x1xf32> -> vector<8x1xf32>
    %131 = vector.broadcast %130 : vector<8x1xf32> to vector<8x8xf32>
    %132 = arith.mulf %127, %131 : vector<8x8xf32>
    %c0_57 = arith.constant 0 : index
    %c0_58 = arith.constant 0 : index
    %c0_59 = arith.constant 0 : index
    %c0_60 = arith.constant 0 : index
    %133 = vector.load %arg15[%c0_57, %c0_58, %c0_59, %c0_60] : memref<1x4x8x8xf32, #tpu.memory_space<vmem>>, vector<1x1x8x8xf32>
    %134 = vector.shape_cast %133 : vector<1x1x8x8xf32> to vector<8x8xf32>
    %135 = vector.shape_cast %132 : vector<8x8xf32> to vector<1x1x8x8xf32>
    tpu.vector_store %arg15[%c0_57, %c0_58, %c0_59, %c0_60], %135 {strides = array<i32>} : memref<1x4x8x8xf32, #tpu.memory_space<vmem>>, vector<1x1x8x8xf32>,
    %cst_61 = arith.constant dense<0.000000e+00> : vector<8x8xf32>
    %136 = tpu.matmul %132, %121, %cst_61 {dimension_numbers = #tpu.dot_dimension_numbers<[1], [0], [0], [1], [0, 0, 1, 1], [], []>} : vector<8x8xf32>, vector<8x8xf32>, vector<8x8xf32> -> vector<8x8xf32>
    %137 = vector.extract_strided_slice %114 {offsets = [0, 8], sizes = [8, 8], strides = [1, 1]} : vector<8x32xf32> to vector<8x8xf32>
    %138 = vector.extract_strided_slice %117 {offsets = [0, 8], sizes = [8, 8], strides = [1, 1]} : vector<8x32xf32> to vector<8x8xf32>
    %139 = vector.extract_strided_slice %118 {offsets = [0, 8], sizes = [8, 8], strides = [1, 1]} : vector<8x32xf32> to vector<8x8xf32>
    "tpu.trace_start"() <{level = 10 : i32, message = "qd,kd->qk"}> : () -> ()
    %cst_62 = arith.constant dense<0.000000e+00> : vector<8x8xf32>
    %140 = tpu.matmul %137, %138, %cst_62 {dimension_numbers = #tpu.dot_dimension_numbers<[1], [1], [0], [0], [0, 0, 1, 0], [], []>} : vector<8x8xf32>, vector<8x8xf32>, vector<8x8xf32> -> vector<8x8xf32>
    "tpu.trace_stop"() : () -> ()
    %cst_63 = arith.constant dense<0xFF800000> : vector<8xf32>
    %141 = vector.multi_reduction <maximumf>, %140, %cst_63 [1] : vector<8x8xf32> to vector<8xf32>
    %142 = vector.shape_cast %141 : vector<8xf32> to vector<8x1xf32>
    %143 = vector.broadcast %142 : vector<8x1xf32> to vector<8x8xf32>
    %144 = arith.subf %140, %143 : vector<8x8xf32>
    %145 = math.exp %144 : vector<8x8xf32>
    %cst_64 = arith.constant dense<0.000000e+00> : vector<8xf32>
    %146 = vector.multi_reduction <add>, %145, %cst_64 [1] : vector<8x8xf32> to vector<8xf32>
    %147 = vector.shape_cast %146 : vector<8xf32> to vector<8x1xf32>
    %148 = tpu.reciprocal %147 : vector<8x1xf32> -> vector<8x1xf32>
    %149 = vector.broadcast %148 : vector<8x1xf32> to vector<8x8xf32>
    %150 = arith.mulf %145, %149 : vector<8x8xf32>
    %c0_65 = arith.constant 0 : index
    %c1_66 = arith.constant 1 : index
    %c0_67 = arith.constant 0 : index
    %c0_68 = arith.constant 0 : index
    %151 = vector.load %arg15[%c0_65, %c1_66, %c0_67, %c0_68] : memref<1x4x8x8xf32, #tpu.memory_space<vmem>>, vector<1x1x8x8xf32>
    %152 = vector.shape_cast %151 : vector<1x1x8x8xf32> to vector<8x8xf32>
    %153 = vector.shape_cast %150 : vector<8x8xf32> to vector<1x1x8x8xf32>
    tpu.vector_store %arg15[%c0_65, %c1_66, %c0_67, %c0_68], %153 {strides = array<i32>} : memref<1x4x8x8xf32, #tpu.memory_space<vmem>>, vector<1x1x8x8xf32>,
    %cst_69 = arith.constant dense<0.000000e+00> : vector<8x8xf32>
    %154 = tpu.matmul %150, %139, %cst_69 {dimension_numbers = #tpu.dot_dimension_numbers<[1], [0], [0], [1], [0, 0, 1, 1], [], []>} : vector<8x8xf32>, vector<8x8xf32>, vector<8x8xf32> -> vector<8x8xf32>
    %155 = vector.extract_strided_slice %114 {offsets = [0, 16], sizes = [8, 8], strides = [1, 1]} : vector<8x32xf32> to vector<8x8xf32>
    %156 = vector.extract_strided_slice %117 {offsets = [0, 16], sizes = [8, 8], strides = [1, 1]} : vector<8x32xf32> to vector<8x8xf32>
    %157 = vector.extract_strided_slice %118 {offsets = [0, 16], sizes = [8, 8], strides = [1, 1]} : vector<8x32xf32> to vector<8x8xf32>
    "tpu.trace_start"() <{level = 10 : i32, message = "qd,kd->qk"}> : () -> ()
    %cst_70 = arith.constant dense<0.000000e+00> : vector<8x8xf32>
    %158 = tpu.matmul %155, %156, %cst_70 {dimension_numbers = #tpu.dot_dimension_numbers<[1], [1], [0], [0], [0, 0, 1, 0], [], []>} : vector<8x8xf32>, vector<8x8xf32>, vector<8x8xf32> -> vector<8x8xf32>
    "tpu.trace_stop"() : () -> ()
    %cst_71 = arith.constant dense<0xFF800000> : vector<8xf32>
    %159 = vector.multi_reduction <maximumf>, %158, %cst_71 [1] : vector<8x8xf32> to vector<8xf32>
    %160 = vector.shape_cast %159 : vector<8xf32> to vector<8x1xf32>
    %161 = vector.broadcast %160 : vector<8x1xf32> to vector<8x8xf32>
    %162 = arith.subf %158, %161 : vector<8x8xf32>
    %163 = math.exp %162 : vector<8x8xf32>
    %cst_72 = arith.constant dense<0.000000e+00> : vector<8xf32>
    %164 = vector.multi_reduction <add>, %163, %cst_72 [1] : vector<8x8xf32> to vector<8xf32>
    %165 = vector.shape_cast %164 : vector<8xf32> to vector<8x1xf32>
    %166 = tpu.reciprocal %165 : vector<8x1xf32> -> vector<8x1xf32>
    %167 = vector.broadcast %166 : vector<8x1xf32> to vector<8x8xf32>
    %168 = arith.mulf %163, %167 : vector<8x8xf32>
    %c0_73 = arith.constant 0 : index
    %c2_74 = arith.constant 2 : index
    %c0_75 = arith.constant 0 : index
    %c0_76 = arith.constant 0 : index
    %169 = vector.load %arg15[%c0_73, %c2_74, %c0_75, %c0_76] : memref<1x4x8x8xf32, #tpu.memory_space<vmem>>, vector<1x1x8x8xf32>
    %170 = vector.shape_cast %169 : vector<1x1x8x8xf32> to vector<8x8xf32>
    %171 = vector.shape_cast %168 : vector<8x8xf32> to vector<1x1x8x8xf32>
    tpu.vector_store %arg15[%c0_73, %c2_74, %c0_75, %c0_76], %171 {strides = array<i32>} : memref<1x4x8x8xf32, #tpu.memory_space<vmem>>, vector<1x1x8x8xf32>,
    %cst_77 = arith.constant dense<0.000000e+00> : vector<8x8xf32>
    %172 = tpu.matmul %168, %157, %cst_77 {dimension_numbers = #tpu.dot_dimension_numbers<[1], [0], [0], [1], [0, 0, 1, 1], [], []>} : vector<8x8xf32>, vector<8x8xf32>, vector<8x8xf32> -> vector<8x8xf32>
    %173 = vector.extract_strided_slice %114 {offsets = [0, 24], sizes = [8, 8], strides = [1, 1]} : vector<8x32xf32> to vector<8x8xf32>
    %174 = vector.extract_strided_slice %117 {offsets = [0, 24], sizes = [8, 8], strides = [1, 1]} : vector<8x32xf32> to vector<8x8xf32>
    %175 = vector.extract_strided_slice %118 {offsets = [0, 24], sizes = [8, 8], strides = [1, 1]} : vector<8x32xf32> to vector<8x8xf32>
    "tpu.trace_start"() <{level = 10 : i32, message = "qd,kd->qk"}> : () -> ()
    %cst_78 = arith.constant dense<0.000000e+00> : vector<8x8xf32>
    %176 = tpu.matmul %173, %174, %cst_78 {dimension_numbers = #tpu.dot_dimension_numbers<[1], [1], [0], [0], [0, 0, 1, 0], [], []>} : vector<8x8xf32>, vector<8x8xf32>, vector<8x8xf32> -> vector<8x8xf32>
    "tpu.trace_stop"() : () -> ()
    %cst_79 = arith.constant dense<0xFF800000> : vector<8xf32>
    %177 = vector.multi_reduction <maximumf>, %176, %cst_79 [1] : vector<8x8xf32> to vector<8xf32>
    %178 = vector.shape_cast %177 : vector<8xf32> to vector<8x1xf32>
    %179 = vector.broadcast %178 : vector<8x1xf32> to vector<8x8xf32>
    %180 = arith.subf %176, %179 : vector<8x8xf32>
    %181 = math.exp %180 : vector<8x8xf32>
    %cst_80 = arith.constant dense<0.000000e+00> : vector<8xf32>
    %182 = vector.multi_reduction <add>, %181, %cst_80 [1] : vector<8x8xf32> to vector<8xf32>
    %183 = vector.shape_cast %182 : vector<8xf32> to vector<8x1xf32>
    %184 = tpu.reciprocal %183 : vector<8x1xf32> -> vector<8x1xf32>
    %185 = vector.broadcast %184 : vector<8x1xf32> to vector<8x8xf32>
    %186 = arith.mulf %181, %185 : vector<8x8xf32>
    %c0_81 = arith.constant 0 : index
    %c3_82 = arith.constant 3 : index
    %c0_83 = arith.constant 0 : index
    %c0_84 = arith.constant 0 : index
    %187 = vector.load %arg15[%c0_81, %c3_82, %c0_83, %c0_84] : memref<1x4x8x8xf32, #tpu.memory_space<vmem>>, vector<1x1x8x8xf32>
    %188 = vector.shape_cast %187 : vector<1x1x8x8xf32> to vector<8x8xf32>
    %189 = vector.shape_cast %186 : vector<8x8xf32> to vector<1x1x8x8xf32>
    tpu.vector_store %arg15[%c0_81, %c3_82, %c0_83, %c0_84], %189 {strides = array<i32>} : memref<1x4x8x8xf32, #tpu.memory_space<vmem>>, vector<1x1x8x8xf32>,
    %cst_85 = arith.constant dense<0.000000e+00> : vector<8x8xf32>
    %190 = tpu.matmul %186, %175, %cst_85 {dimension_numbers = #tpu.dot_dimension_numbers<[1], [0], [0], [1], [0, 0, 1, 1], [], []>} : vector<8x8xf32>, vector<8x8xf32>, vector<8x8xf32> -> vector<8x8xf32>
    %191 = tpu.concatenate %136, %154, %172, %190 in 1 : vector<8x8xf32>, vector<8x8xf32>, vector<8x8xf32>, vector<8x8xf32> -> vector<8x32xf32>
    %cst_86 = arith.constant dense<0.000000e+00> : vector<8x32xf32>
    %192 = tpu.matmul %191, %111, %cst_86 {dimension_numbers = #tpu.dot_dimension_numbers<[1], [0], [0], [1], [0, 0, 1, 1], [], []>} : vector<8x32xf32>, vector<32x32xf32>, vector<8x32xf32> -> vector<8x32xf32>
    %193 = arith.addf %192, %109 : vector<8x32xf32>
    %194 = vector.extract_strided_slice %112 {offsets = [0, 0], sizes = [1, 32], strides = [1, 1]} : vector<2x32xf32> to vector<1x32xf32>
    %195 = vector.extract_strided_slice %112 {offsets = [1, 0], sizes = [1, 32], strides = [1, 1]} : vector<2x32xf32> to vector<1x32xf32>
    %cst_87 = arith.constant dense<0.000000e+00> : vector<8xf32>
    %196 = vector.multi_reduction <add>, %193, %cst_87 [1] : vector<8x32xf32> to vector<8xf32>
    %197 = vector.shape_cast %196 : vector<8xf32> to vector<8x1xf32>
    %cst_88 = arith.constant 3.200000e+01 : f32
    %198 = vector.broadcast %cst_88 : f32 to vector<8x1xf32>
    %199 = arith.divf %197, %198 : vector<8x1xf32>
    %200 = vector.broadcast %199 : vector<8x1xf32> to vector<8x32xf32>
    %201 = arith.subf %193, %200 : vector<8x32xf32>
    %202 = arith.mulf %201, %201 : vector<8x32xf32>
    %cst_89 = arith.constant dense<0.000000e+00> : vector<8xf32>
    %203 = vector.multi_reduction <add>, %202, %cst_89 [1] : vector<8x32xf32> to vector<8xf32>
    %204 = vector.shape_cast %203 : vector<8xf32> to vector<8x1xf32>
    %cst_90 = arith.constant 3.200000e+01 : f32
    %205 = vector.broadcast %cst_90 : f32 to vector<8x1xf32>
    %206 = arith.divf %204, %205 : vector<8x1xf32>
    %207 = vector.broadcast %199 : vector<8x1xf32> to vector<8x32xf32>
    %208 = arith.subf %193, %207 : vector<8x32xf32>
    %cst_91 = arith.constant 9.99999997E-7 : f32
    %209 = vector.broadcast %cst_91 : f32 to vector<8x1xf32>
    %210 = arith.addf %206, %209 : vector<8x1xf32>
    %211 = math.rsqrt %210 : vector<8x1xf32>
    %212 = vector.broadcast %211 : vector<8x1xf32> to vector<8x32xf32>
    %213 = arith.mulf %208, %212 : vector<8x32xf32>
    %214 = vector.broadcast %194 : vector<1x32xf32> to vector<8x32xf32>
    %215 = arith.mulf %213, %214 : vector<8x32xf32>
    %216 = vector.broadcast %195 : vector<1x32xf32> to vector<8x32xf32>
    %217 = arith.addf %215, %216 : vector<8x32xf32>
    %c0_92 = arith.constant 0 : index
    %c0_93 = arith.constant 0 : index
    %218 = vector.load %arg9[%c0_92, %c0_93] : memref<32x64xf32, #tpu.memory_space<vmem>>, vector<32x64xf32>
    %c0_94 = arith.constant 0 : index
    %c0_95 = arith.constant 0 : index
    %219 = vector.load %arg10[%c0_94, %c0_95] : memref<1x64xf32, #tpu.memory_space<vmem>>, vector<1x64xf32>
    %c0_96 = arith.constant 0 : index
    %c0_97 = arith.constant 0 : index
    %220 = vector.load %arg11[%c0_96, %c0_97] : memref<64x32xf32, #tpu.memory_space<vmem>>, vector<64x32xf32>
    %c0_98 = arith.constant 0 : index
    %c0_99 = arith.constant 0 : index
    %221 = vector.load %arg12[%c0_98, %c0_99] : memref<3x32xf32, #tpu.memory_space<vmem>>, vector<3x32xf32>
    %cst_100 = arith.constant dense<0.000000e+00> : vector<8x64xf32>
    %222 = tpu.matmul %217, %218, %cst_100 {dimension_numbers = #tpu.dot_dimension_numbers<[1], [0], [0], [1], [0, 0, 1, 1], [], []>} : vector<8x32xf32>, vector<32x64xf32>, vector<8x64xf32> -> vector<8x64xf32>
    %223 = vector.broadcast %219 : vector<1x64xf32> to vector<8x64xf32>
    %224 = arith.addf %222, %223 : vector<8x64xf32>
    %cst_101 = arith.constant 0.000000e+00 : f32
    %225 = vector.broadcast %cst_101 : f32 to vector<8x64xf32>
    %226 = arith.maximumf %224, %225 : vector<8x64xf32>
    %cst_102 = arith.constant dense<0.000000e+00> : vector<8x32xf32>
    %227 = tpu.matmul %226, %220, %cst_102 {dimension_numbers = #tpu.dot_dimension_numbers<[1], [0], [0], [1], [0, 0, 1, 1], [], []>} : vector<8x64xf32>, vector<64x32xf32>, vector<8x32xf32> -> vector<8x32xf32>
    %228 = vector.extract_strided_slice %221 {offsets = [0, 0], sizes = [1, 32], strides = [1, 1]} : vector<3x32xf32> to vector<1x32xf32>
    %229 = vector.broadcast %228 : vector<1x32xf32> to vector<8x32xf32>
    %230 = arith.addf %227, %229 : vector<8x32xf32>
    %231 = arith.addf %230, %217 : vector<8x32xf32>
    %232 = vector.extract_strided_slice %221 {offsets = [1, 0], sizes = [1, 32], strides = [1, 1]} : vector<3x32xf32> to vector<1x32xf32>
    %233 = vector.extract_strided_slice %221 {offsets = [2, 0], sizes = [1, 32], strides = [1, 1]} : vector<3x32xf32> to vector<1x32xf32>
    %cst_103 = arith.constant dense<0.000000e+00> : vector<8xf32>
    %234 = vector.multi_reduction <add>, %231, %cst_103 [1] : vector<8x32xf32> to vector<8xf32>
    %235 = vector.shape_cast %234 : vector<8xf32> to vector<8x1xf32>
    %cst_104 = arith.constant 3.200000e+01 : f32
    %236 = vector.broadcast %cst_104 : f32 to vector<8x1xf32>
    %237 = arith.divf %235, %236 : vector<8x1xf32>
    %238 = vector.broadcast %237 : vector<8x1xf32> to vector<8x32xf32>
    %239 = arith.subf %231, %238 : vector<8x32xf32>
    %240 = arith.mulf %239, %239 : vector<8x32xf32>
    %cst_105 = arith.constant dense<0.000000e+00> : vector<8xf32>
    %241 = vector.multi_reduction <add>, %240, %cst_105 [1] : vector<8x32xf32> to vector<8xf32>
    %242 = vector.shape_cast %241 : vector<8xf32> to vector<8x1xf32>
    %cst_106 = arith.constant 3.200000e+01 : f32
    %243 = vector.broadcast %cst_106 : f32 to vector<8x1xf32>
    %244 = arith.divf %242, %243 : vector<8x1xf32>
    %245 = vector.broadcast %237 : vector<8x1xf32> to vector<8x32xf32>
    %246 = arith.subf %231, %245 : vector<8x32xf32>
    %cst_107 = arith.constant 9.99999997E-7 : f32
    %247 = vector.broadcast %cst_107 : f32 to vector<8x1xf32>
    %248 = arith.addf %244, %247 : vector<8x1xf32>
    %249 = math.rsqrt %248 : vector<8x1xf32>
    %250 = vector.broadcast %249 : vector<8x1xf32> to vector<8x32xf32>
    %251 = arith.mulf %246, %250 : vector<8x32xf32>
    %252 = vector.broadcast %232 : vector<1x32xf32> to vector<8x32xf32>
    %253 = arith.mulf %251, %252 : vector<8x32xf32>
    %254 = vector.broadcast %233 : vector<1x32xf32> to vector<8x32xf32>
    %255 = arith.addf %253, %254 : vector<8x32xf32>
    %c0_108 = arith.constant 0 : index
    %c0_109 = arith.constant 0 : index
    %c0_110 = arith.constant 0 : index
    %256 = vector.load %arg13[%c0_108, %c0_109, %c0_110] : memref<1x8x32xf32, #tpu.memory_space<vmem>>, vector<1x8x32xf32>
    %257 = vector.shape_cast %256 : vector<1x8x32xf32> to vector<8x32xf32>
    %258 = vector.shape_cast %255 : vector<8x32xf32> to vector<1x8x32xf32>
    tpu.vector_store %arg13[%c0_108, %c0_109, %c0_110], %258 {strides = array<i32>} : memref<1x8x32xf32, #tpu.memory_space<vmem>>, vector<1x8x32xf32>,
    return
  }
  func.func @transform_0(%arg0: i32) -> (i32, i32, i32) {
    %c0_i32 = arith.constant 0 : i32
    %c0_i32_0 = arith.constant 0 : i32
    %c0_i32_1 = arith.constant 0 : i32
    return %arg0, %c0_i32, %c0_i32_0 : i32, i32, i32
  }
  func.func @transform_1(%arg0: i32) -> (i32, i32, i32) {
    %c0_i32 = arith.constant 0 : i32
    %c0_i32_0 = arith.constant 0 : i32
    %c0_i32_1 = arith.constant 0 : i32
    return %arg0, %c0_i32, %c0_i32_0 : i32, i32, i32
  }
  func.func @transform_2(%arg0: i32) -> (i32, i32) {
    %c0_i32 = arith.constant 0 : i32
    %c0_i32_0 = arith.constant 0 : i32
    %c0_i32_1 = arith.constant 0 : i32
    return %c0_i32, %c0_i32_0 : i32, i32
  }
  func.func @transform_3(%arg0: i32) -> (i32, i32) {
    %c0_i32 = arith.constant 0 : i32
    %c0_i32_0 = arith.constant 0 : i32
    %c0_i32_1 = arith.constant 0 : i32
    return %c0_i32, %c0_i32_0 : i32, i32
  }
  func.func @transform_4(%arg0: i32) -> (i32, i32) {
    %c0_i32 = arith.constant 0 : i32
    %c0_i32_0 = arith.constant 0 : i32
    %c0_i32_1 = arith.constant 0 : i32
    return %c0_i32, %c0_i32_0 : i32, i32
  }
  func.func @transform_5(%arg0: i32) -> (i32, i32) {
    %c0_i32 = arith.constant 0 : i32
    %c0_i32_0 = arith.constant 0 : i32
    %c0_i32_1 = arith.constant 0 : i32
    return %c0_i32, %c0_i32_0 : i32, i32
  }
  func.func @transform_6(%arg0: i32) -> (i32, i32) {
    %c0_i32 = arith.constant 0 : i32
    %c0_i32_0 = arith.constant 0 : i32
    %c0_i32_1 = arith.constant 0 : i32
    return %c0_i32, %c0_i32_0 : i32, i32
  }
  func.func @transform_7(%arg0: i32) -> (i32, i32) {
    %c0_i32 = arith.constant 0 : i32
    %c0_i32_0 = arith.constant 0 : i32
    %c0_i32_1 = arith.constant 0 : i32
    return %c0_i32, %c0_i32_0 : i32, i32
  }
  func.func @transform_8(%arg0: i32) -> (i32, i32) {
    %c0_i32 = arith.constant 0 : i32
    %c0_i32_0 = arith.constant 0 : i32
    %c0_i32_1 = arith.constant 0 : i32
    return %c0_i32, %c0_i32_0 : i32, i32
  }
  func.func @transform_9(%arg0: i32) -> (i32, i32) {
    %c0_i32 = arith.constant 0 : i32
    %c0_i32_0 = arith.constant 0 : i32
    %c0_i32_1 = arith.constant 0 : i32
    return %c0_i32, %c0_i32_0 : i32, i32
  }
  func.func @transform_10(%arg0: i32) -> (i32, i32) {
    %c0_i32 = arith.constant 0 : i32
    %c0_i32_0 = arith.constant 0 : i32
    %c0_i32_1 = arith.constant 0 : i32
    return %c0_i32, %c0_i32_0 : i32, i32
  }
  func.func @transform_11(%arg0: i32) -> (i32, i32) {
    %c0_i32 = arith.constant 0 : i32
    %c0_i32_0 = arith.constant 0 : i32
    %c0_i32_1 = arith.constant 0 : i32
    return %c0_i32, %c0_i32_0 : i32, i32
  }
  func.func @transform_12(%arg0: i32) -> (i32, i32, i32) {
    %c0_i32 = arith.constant 0 : i32
    %c0_i32_0 = arith.constant 0 : i32
    %c0_i32_1 = arith.constant 0 : i32
    return %arg0, %c0_i32, %c0_i32_0 : i32, i32, i32
  }
  func.func @transform_13(%arg0: i32) -> (i32, i32, i32, i32) {
    %c0_i32 = arith.constant 0 : i32
    %c0_i32_0 = arith.constant 0 : i32
    %c0_i32_1 = arith.constant 0 : i32
    %c0_i32_2 = arith.constant 0 : i32
    return %arg0, %c0_i32, %c0_i32_0, %c0_i32_1 : i32, i32, i32, i32
  }
  func.func @transform_14(%arg0: i32) -> (i32, i32, i32, i32) {
    %c0_i32 = arith.constant 0 : i32
    %c0_i32_0 = arith.constant 0 : i32
    %c0_i32_1 = arith.constant 0 : i32
    %c0_i32_2 = arith.constant 0 : i32
    return %arg0, %c0_i32, %c0_i32_0, %c0_i32_1 : i32, i32, i32, i32
  }
}

</mosaic_0001>

<bundles_post_ra>
// kernel: tpu_custom_call.1
= control target key start
LH: loop header
LB: loop body
LE: loop exit
PB: predicated region body
PF: predicated region fallthrough
CT: control target
= control target key end

     0   :  { %s4512_s0 = inlined_call_operand.hbm [shape: f32[2,8,32], index: 0, kind: input, shape index: {}]   ;;  %s4513_s1 = inlined_call_operand.hbm [shape: f32[2,8,32], index: 1, kind: input, shape index: {}]   ;;  %s4514_s2 = inlined_call_operand.vmem [shape: f32[32,96], index: 2, kind: input, shape index: {}]   ;;  %s4515_s3 = inlined_call_operand.vmem [shape: f32[32,32], index: 3, kind: input, shape index: {}]   ;;  %s4516_s4 = inlined_call_operand.hbm [shape: f32[2,32], index: 4, kind: input, shape index: {}]   ;;  %s4517_s5 = inlined_call_operand.vmem [shape: f32[32,96], index: 5, kind: input, shape index: {}]   ;;  %s4518_s6 = inlined_call_operand.hbm [shape: f32[32,32], index: 6, kind: input, shape index: {}]   ;;  %s4519_s7 = inlined_call_operand.hbm [shape: f32[2,32], index: 7, kind: input, shape index: {}]   ;;  %s4520_s8 = inlined_call_operand.hbm [shape: f32[32,64], index: 8, kind: input, shape index: {}]   ;;  %s4521_s9 = inlined_call_operand.vmem [shape: f32[1,64], index: 9, kind: input, shape index: {}]   ;;  %s4522_s10 = inlined_call_operand.vmem [shape: f32[64,32], index: 10, kind: input, shape index: {}]   ;;  %s4523_s11 = inlined_call_operand.vmem [shape: f32[3,32], index: 11, kind: input, shape index: {}]   ;;  %s4524_s12 = inlined_call_operand.hbm [shape: f32[2,8,32], index: 12, kind: output, shape index: {0}]   ;;  %s4525_s13 = inlined_call_operand.hbm [shape: f32[2,4,8,8], index: 13, kind: output, shape index: {1}]   ;;  %s4526_s14 = inlined_call_operand.hbm [shape: f32[2,4,8,8], index: 14, kind: output, shape index: {2}]  }
   0x1   :  { %4546 = sst [smem:[#allocation27_spill]] %s4516_s4 }
   0x2   :  { %4547 = sst [smem:[#allocation28_spill]] %s4518_s6 }
   0x3   :  { %4548 = sst [smem:[#allocation29_spill]] %s4519_s7 }
   0x4   :  { %4549 = sst [smem:[#allocation30_spill]] %s4520_s8 }
   0x5   :  { %4550 = sst [smem:[#allocation31_spill]] %s4523_s11 }
   0x6   :  { %4551 = sst [smem:[#allocation32_spill]] %s4524_s12 }
   0x7   :  { %4552 = sst [smem:[#allocation33_spill]] %s4525_s13 }
   0x8   :  { %4553 = sst [smem:[#allocation34_spill]] %s4526_s14 }
   0x9   :  { %20 = vsyncpa [#allocation3], 0 }
   0xa   :  { %22 = vsyncpa [#allocation3 + $0x1], 0 }
   0xb   :  { %23 = vsyncpa [#allocation6], 0 }
   0xc   :  { %25 = vsyncpa [#allocation6 + $0x1], 0 }
   0xd   :  { %26 = vsyncpa [#allocation9], 0 }
   0xe   :  { %27 = vsyncpa [#allocation12], 0 }
   0xf   :  { %28 = vsyncpa [#allocation4], 0 }
  0x10   :  { %30 = vsyncpa [#allocation4 + $0x1], 0 }
  0x11   :  { %31 = vsyncpa [#allocation15], 0 }
  0x12   :  { %33 = vsyncpa [#allocation15 + $0x1], 0  ;;  %s3795_s29 = smov 0   ;;  %s3797_s30 = smov 0  }
  0x13   :  { %s3799_s15 = smov 0   ;;  %s3801_s16 = smov 0  }
  0x14 LB: > { %4554 = sst [smem:[#allocation24_spill]] %s3685_s15  ;;  %s3691_s17 = smov [#allocation7]   ;;  %s3689_s16 = sphi %s3801_s16, %s4593_s16   ;;  %s3685_s15 = sphi %s3799_s15, %s4595_s15   ;;  %s3681_s30 = sphi %s3797_s30, %s4597_s30   ;;  %s3677_s29 = sphi %s3795_s29, %s4596_s29  }
  0x15   : > { %s403_s18 = sshll.u32 %s3691_s17, 4  ;;  %s3816_s19 = sadd.s32 4294967295, %s3689_s16   ;;  %s404_s18 = int_to_ptr.vmem [resolvable:$true] %s403_s18 }
  0x16   : > { %p2851_p0 = scmp.ge.s32.totalorder %s3689_s16, 1  ;;  %p4529_p1 = scmp.eq.s32.totalorder %s3816_s19, 0 }
  0x17   : > { %p384_p2 = scmp.lt.s32.totalorder %s3689_s16, 3  ;;  %s3692_s21 = smov [#allocation8]  }
  0x18   : > { %s416_s22 = sshll.u32 %s3692_s21, 4  ;;  %s3693_s24 = smov [#allocation10]   ;;  %s3828_s22 = int_to_ptr.vmem [resolvable:$true] %s416_s22 }
  0x19   : > { %p3821_p3 = pnand %p2851_p0, %p384_p2  ;;  %s430_s25 = sshll.u32 %s3693_s24, 4  ;;  %s3836_s25 = int_to_ptr.vmem [resolvable:$true] %s430_s25 }
  0x1a   : > { %s4557_s4 = sld [smem:[#allocation27_spill]] }
  0x1b   : > { %s4555_s20 = scalar_select %p3821_p3, 1, 0 }
  0x1c   : > { %p3231_p5 = pneg %p3821_p3 }
  0x1e   : > { %p3832_p6 = pnand %p3231_p5, %p4529_p1 }
  0x20   : > { %s3375_s28 = scalar_lea.hbm %s4557_s4, 32  ;;  %p3846_p8 = pneg %p3832_p6 }
  0x21   : > { %p3376_p7 = scmp.ne.s32.totalorder %s4557_s4, %s3375_s28  ;;  %p3382_p11 = scmp.lt.u32.totalorder %s3375_s28, %s4557_s4 }
  0x23   : > { %p3378_p9 = pnand %p3846_p8, %p3376_p7 }
  0x25   : > { %p3379_p10 = pneg %p3378_p9 }
  0x27   : > { %p3384_p12 = pnand %p3382_p11, %p3379_p10 }
  0x29   : > { %3387 = shalt.err (!%p3384_p12)
}
  0x2a   : > { %s3388_s26 = scalar_lea.vmem %s404_s18, 32  ;;  %p3396_p5 = scmp.lt.s32.totalorder %s404_s18, %s404_s18 }
  0x2b   : > { %p3389_p13 = scmp.ne.s32.totalorder %s404_s18, %s3388_s26  ;;  %p3397_p4 = scmp.lt.s32.totalorder %s3388_s26, %s3388_s26 }
  0x2d   : > { %p3391_p0 = pnand %p3389_p13, %p3846_p8  ;;  %p3398_p1 = por %p3397_p4, %p3396_p5 }
  0x2f   : > { %p3392_p2 = pneg %p3391_p0 }
  0x31   : > { %p3399_p3 = pnand %p3398_p1, %p3392_p2 }
  0x33   : > { %3402 = shalt.err (!%p3399_p3)
}
  0x34   : > { %3234 = dma.hbm_to_vmem [thread:$0]  (!%p3832_p6), %s4557_s4, 32, %s404_s18, [#allocation6]  }
  0x35   : > { %s4559_s6 = sld [smem:[#allocation28_spill]] }
  0x3b   : > { %s3403_s17 = scalar_lea.hbm %s4559_s6, 512 }
  0x3c   : > { %p3404_p7 = scmp.ne.s32.totalorder %s4559_s6, %s3403_s17  ;;  %p3410_p1 = scmp.lt.u32.totalorder %s3403_s17, %s4559_s6 }
  0x3e   : > { %p3406_p9 = pnand %p3404_p7, %p3846_p8 }
  0x40   : > { %p3407_p4 = pneg %p3406_p9 }
  0x42   : > { %p3412_p3 = pnand %p3410_p1, %p3407_p4 }
  0x44   : > { %3415 = shalt.err (!%p3412_p3)
}
  0x45   : > { %s3416_s18 = scalar_lea.vmem %s3828_s22, 512  ;;  %p3424_p13 = scmp.lt.s32.totalorder %s3828_s22, %s3828_s22 }
  0x46   : > { %p3417_p10 = scmp.ne.s32.totalorder %s3828_s22, %s3416_s18  ;;  %p3425_p0 = scmp.lt.s32.totalorder %s3416_s18, %s3416_s18 }
  0x48   : > { %p3419_p11 = pnand %p3417_p10, %p3846_p8  ;;  %p3426_p2 = por %p3425_p0, %p3424_p13 }
  0x4a   : > { %p3420_p12 = pneg %p3419_p11 }
  0x4c   : > { %p3427_p5 = pnand %p3426_p2, %p3420_p12 }
  0x4e   : > { %3430 = shalt.err (!%p3427_p5)
}
  0x4f   : > { %s4532_s13 = smov 128   ;;  %s3695_s11 = smov 8  }
  0x50   : > { %3237 = dma.hbm_to_vmem [thread:$0]  (!%p3832_p6), %s4559_s6, 512, %s3828_s22, [#allocation9], %s4532_s13, %s4532_s13, %s3695_s11  }
  0x51   : > { %s4560_s7 = sld [smem:[#allocation29_spill]] }
  0x57   : > { %s3431_s17 = scalar_lea.hbm %s4560_s7, 32 }
  0x58   : > { %p3432_p7 = scmp.ne.s32.totalorder %s4560_s7, %s3431_s17  ;;  %p3438_p1 = scmp.lt.u32.totalorder %s3431_s17, %s4560_s7 }
  0x5a   : > { %p3434_p9 = pnand %p3432_p7, %p3846_p8 }
  0x5c   : > { %p3435_p4 = pneg %p3434_p9 }
  0x5e   : > { %p3440_p3 = pnand %p3438_p1, %p3435_p4 }
  0x60   : > { %3443 = shalt.err (!%p3440_p3)
}
  0x61   : > { %s3444_s22 = scalar_lea.vmem %s3836_s25, 32  ;;  %p3452_p13 = scmp.lt.s32.totalorder %s3836_s25, %s3836_s25 }
  0x62   : > { %p3445_p10 = scmp.ne.s32.totalorder %s3836_s25, %s3444_s22  ;;  %p3453_p0 = scmp.lt.s32.totalorder %s3444_s22, %s3444_s22 }
  0x64   : > { %p3447_p11 = pnand %p3445_p10, %p3846_p8  ;;  %p3454_p2 = por %p3453_p0, %p3452_p13 }
  0x66   : > { %p3448_p12 = pneg %p3447_p11 }
  0x68   : > { %p3455_p5 = pnand %p3454_p2, %p3448_p12 }
  0x6a   : > { %3458 = shalt.err (!%p3455_p5)
}
  0x6b   : > { %3240 = dma.hbm_to_vmem [thread:$0]  (!%p3832_p6), %s4560_s7, 32, %s3836_s25, [#allocation9]  }
  0x6c   : > { %s3696_s27 = smov [#allocation11]   ;;  %s4561_s8 = sld [smem:[#allocation30_spill]] }
  0x6d   : > { %s440_s14 = sshll.u32 %s3696_s27, 4  ;;  %s441_s14 = int_to_ptr.vmem [resolvable:$true] %s440_s14 }
  0x72   : > { %s3459_s24 = scalar_lea.hbm %s4561_s8, 512 }
  0x73   : > { %p3460_p7 = scmp.ne.s32.totalorder %s4561_s8, %s3459_s24  ;;  %p3466_p1 = scmp.lt.u32.totalorder %s3459_s24, %s4561_s8 }
  0x75   : > { %p3462_p9 = pnand %p3460_p7, %p3846_p8 }
  0x77   : > { %p3463_p4 = pneg %p3462_p9 }
  0x79   : > { %p3468_p3 = pnand %p3466_p1, %p3463_p4 }
  0x7b   : > { %3471 = shalt.err (!%p3468_p3)
}
  0x7c   : > { %s3472_s25 = scalar_lea.vmem %s441_s14, 512  ;;  %p3480_p13 = scmp.lt.s32.totalorder %s441_s14, %s441_s14 }
  0x7d   : > { %p3473_p10 = scmp.ne.s32.totalorder %s441_s14, %s3472_s25  ;;  %p3481_p0 = scmp.lt.s32.totalorder %s3472_s25, %s3472_s25 }
  0x7f   : > { %p3475_p11 = pnand %p3473_p10, %p3846_p8  ;;  %p3482_p2 = por %p3481_p0, %p3480_p13 }
  0x81   : > { %p3476_p12 = pneg %p3475_p11 }
  0x83   : > { %p3483_p5 = pnand %p3482_p2, %p3476_p12 }
  0x85   : > { %3486 = shalt.err (!%p3483_p5)
}
  0x86   : > { %s4562_s4 = smov 128   ;;  %s4533_s23 = sadd.s32 4294967294, %s3689_s16  }
  0x87   : > { %3243 = dma.hbm_to_vmem [thread:$0]  (!%p3832_p6), %s4561_s8, 512, %s441_s14, [#allocation12], %s4562_s4, %s4562_s4, %s3695_s11  }
  0x88   : > { %s3934_s21 = sadd.s32 1, %s3689_s16   ;;  %s46_s28 = sadd.s32 1, %s3685_s15 }
  0x89   : > { %4563 = sst [smem:[#allocation25_spill]] %s3934_s21  ;;  %s43_s27 = ssub.s32 %s3689_s16, %s3934_s21 }
  0x8a   : > { %p44_p8 = scmp.eq.s32.totalorder %s43_s27, 0  ;;  %p53_p7 = scmp.ne.s32.totalorder %s3685_s15, %s3681_s30 }
  0x8b   : > { %p54_p9 = scmp.eq.s32.totalorder %s3689_s16, 0  ;;  %p59_p4 = scmp.ne.s32.totalorder %s3681_s30, %s3677_s29 }
  0x8c   : > { %s3945_s17 = scalar_select %p44_p8, %s3685_s15, %s46_s28  }
  0x8d   : > { %p3947_p1 = por %p54_p9, %p53_p7  ;;  %p4566_p3 = scmp.eq.s32.totalorder %s3816_s19, 0 }
  0x8e   : > { %4564 = sst [smem:[#allocation26_spill]] %s3945_s17  ;;  %p319_p10 = scmp.eq.s32.totalorder %s3816_s19, 1 }
  0x8f   : > { %p3953_p6 = por %p4566_p3, %p59_p4  ;;  %p325_p11 = scmp.eq.s32.totalorder %s4533_s23, 1 }
  0x90   : > { %p3265_p12 = scmp.lt.s32.totalorder %s3689_s16, 2  ;;  %s463_s14 = sand.u32 1, %s3685_s15  }
  0x91   : > { %s4567_s11 = scalar_select %p3953_p6, 1, 0 }
  0x92   : > { %p3962_p13 = por %p319_p10, %p53_p7  ;;  %p3966_p0 = por %p325_p11, %p59_p4 }
  0x93   : > { %s3970_s22 = sshll.u32 %s463_s14, 3  ;;  %s2858_s25 = sshll.u32 %s3689_s16, 7 }
  0x94   : > { %s4568_s26 = scalar_select %p3962_p13, 1, 0 }
  0x95   : > { %s4569_s18 = scalar_select %p3966_p0, 1, 0 }
  0x96   : > { %s3976_s12 = scalar_lea.hbm %s4512_s0, %s2858_s25  ;;  %s467_s27 = scalar_lea.vmem [#allocation2], %s3970_s22 }
  0x97   : > { %s474_s28 = sshll.u32 %s467_s27, 4  ;;  %p3983_p2 = pnand %p3265_p12, %p3947_p1  ;;  %s3979_s28 = int_to_ptr.vmem [resolvable:$true] %s474_s28 }
  0x98   : > { %s3990_s4 = scalar_lea.hbm %s4513_s1, %s2858_s25  ;;  %s481_s13 = sand.u32 1, %s3689_s16  }
  0x99   : > { %s464_s8 = scalar_lea.sflag [#allocation3], %s463_s14  ;;  %s3487_s17 = scalar_lea.hbm %s3976_s12, 128 }
  0x9a   : > { %p3488_p5 = scmp.ne.s32.totalorder %s3976_s12, %s3487_s17  ;;  %p3489_p8 = pneg %p3983_p2 }
  0x9b   : > { %s3492_s15 = scalar_lea.hbm %s4512_s0, 256  ;;  %p3493_p4 = scmp.lt.u32.totalorder %s3976_s12, %s4512_s0 }
  0x9c   : > { %p3490_p7 = pnand %p3489_p8, %p3488_p5  ;;  %p3494_p1 = scmp.lt.u32.totalorder %s3492_s15, %s3487_s17 }
  0x9d   : > { %p3496_p10 = scmp.lt.u32.totalorder %s3487_s17, %s3976_s12 }
  0x9e   : > { %p3491_p9 = pneg %p3490_p7  ;;  %p3495_p3 = por %p3494_p1, %p3493_p4 }
  0xa0   : > { %p3497_p11 = por %p3496_p10, %p3495_p3 }
  0xa2   : > { %p3498_p12 = pnand %p3497_p11, %p3491_p9 }
  0xa4   : > { %3501 = shalt.err (!%p3498_p12)
}
  0xa5   : > { %s3502_s7 = scalar_lea.vmem %s3979_s28, 128  ;;  %s3697_s14 = smov [#allocation2]  }
  0xa6   : > { %p3503_p5 = scmp.ne.s32.totalorder %s3979_s28, %s3502_s7  ;;  %s3507_s25 = sshll.u32 %s3697_s14, 4  ;;  %s3508_s25 = int_to_ptr.vmem [resolvable:$false] %s3507_s25 }
  0xa7   : > { %s3509_s21 = scalar_lea.vmem %s3508_s25, 256  ;;  %p3510_p13 = scmp.lt.s32.totalorder %s3979_s28, %s3508_s25 }
  0xa8   : > { %p3505_p7 = pnand %p3503_p5, %p3489_p8  ;;  %p3511_p4 = scmp.lt.s32.totalorder %s3509_s21, %s3502_s7 }
  0xaa   : > { %p3506_p0 = pneg %p3505_p7  ;;  %p3512_p1 = por %p3511_p4, %p3510_p13 }
  0xac   : > { %p3513_p3 = pnand %p3512_p1, %p3506_p0 }
  0xae   : > { %3516 = shalt.err (!%p3513_p3)
}
  0xaf   : > { %3247 = dma.hbm_to_vmem [thread:$0]  (!%p3983_p2), %s3976_s12, 128, %s3979_s28, %s464_s8  }
  0xb0   : > { %s485_s15 = scalar_lea.vmem [#allocation5], %s3970_s22  ;;  %s482_s24 = scalar_lea.sflag [#allocation6], %s481_s13 }
  0xb1   : > { %s492_s17 = sshll.u32 %s485_s15, 4  ;;  %s3517_s27 = scalar_lea.hbm %s3990_s4, 128  ;;  %s493_s17 = int_to_ptr.vmem [resolvable:$true] %s492_s17 }
  0xb2   : > { %p3518_p13 = scmp.ne.s32.totalorder %s3990_s4, %s3517_s27  ;;  %s3522_s14 = scalar_lea.hbm %s4513_s1, 256 }
  0xb3   : > { %p3523_p10 = scmp.lt.u32.totalorder %s3990_s4, %s4513_s1  ;;  %p3524_p11 = scmp.lt.u32.totalorder %s3522_s14, %s3517_s27 }
  0xb4   : > { %p3520_p0 = pnand %p3518_p13, %p3489_p8  ;;  %p3526_p5 = scmp.lt.u32.totalorder %s3517_s27, %s3990_s4 }
  0xb5   : > { %p3525_p12 = por %p3524_p11, %p3523_p10 }
  0xb6   : > { %p3521_p9 = pneg %p3520_p0 }
  0xb7   : > { %p3527_p7 = por %p3526_p5, %p3525_p12 }
  0xb9   : > { %p3528_p4 = pnand %p3527_p7, %p3521_p9 }
  0xbb   : > { %3531 = shalt.err (!%p3528_p4)
}
  0xbc   : > { %s3532_s8 = scalar_lea.vmem %s493_s17, 128  ;;  %s3698_s22 = smov [#allocation5]  }
  0xbd   : > { %p3533_p1 = scmp.ne.s32.totalorder %s493_s17, %s3532_s8  ;;  %s3537_s12 = sshll.u32 %s3698_s22, 4  ;;  %s3538_s12 = int_to_ptr.vmem [resolvable:$false] %s3537_s12 }
  0xbe   : > { %s3539_s28 = scalar_lea.vmem %s3538_s12, 256  ;;  %p3540_p0 = scmp.lt.s32.totalorder %s493_s17, %s3538_s12 }
  0xbf   : > { %p3535_p3 = pnand %p3533_p1, %p3489_p8  ;;  %p3541_p6 = scmp.lt.s32.totalorder %s3539_s28, %s3532_s8 }
  0xc1   : > { %p3536_p13 = pneg %p3535_p3  ;;  %p3542_p10 = por %p3541_p6, %p3540_p0 }
  0xc3   : > { %p3543_p11 = pnand %p3542_p10, %p3536_p13 }
  0xc5   : > { %3546 = shalt.err (!%p3543_p11)
}
  0xc6   : > { %3250 = dma.hbm_to_vmem [thread:$0]  (!%p3983_p2), %s3990_s4, 128, %s493_s17, %s482_s24  }
  0xc7   : > { %p4571_p9 = scmp.ne.s32.totalorder %s4555_s20, 0 }
  0xc8   : > { %s4043_s13 = sand.u32 (!%p4571_p9), 1, %s3681_s30   ;;  %p4572_p6 = scmp.ne.s32.totalorder (!%p4571_p9), %s4567_s11, 0 }
  0xc9   : > { %501 = sbr.rel (%p4571_p9) target bundleno = 4474 (0x117a), region = 68  ;;  %s4046_s15 = sshll.u32 (!%p4571_p9), %s4043_s13, 3 }
  0xca   : > { %s504_s27 = scalar_lea.sflag (!%p4571_p9), [#allocation3], %s4043_s13  ;;  %s507_s6 = scalar_lea.vmem (!%p4571_p9), [#allocation2], %s4046_s15 }
  0xd0   : > { %3648 = dma.done.wait (%p4572_p6), %s504_s27, 128  }
  0xd1   : > { %3650 = vsyncadd (%p4572_p6), %s504_s27, 4294967168  ;;  %s4539_s20 = sand.u32 1, %s3816_s19   ;;  %s516_s4 = scalar_lea.vmem [#allocation5], %s4046_s15 }
  0xd2   : > { %s513_s23 = scalar_lea.sflag [#allocation6], %s4539_s20 }
  0xd3   : > { %3652 = dma.done.wait (%p4572_p6), %s513_s23, 128  }
  0xd4   : > { %3654 = vsyncadd (%p4572_p6), %s513_s23, 4294967168  ;;  %p4573_p2 = scmp.eq.s32.totalorder %s3816_s19, 0 }
  0xd6   : > { %3656 = dma.done.wait (%p4573_p2), [#allocation6], 32   ;;  %p4574_p8 = pmov %p4573_p2 }
  0xd7   : > { %p4575_p12 = pmov %p4573_p2 }
  0xd8   : > { %3658 = vsyncadd (%p4574_p8), [#allocation6], 4294967264 }
  0xd9   : > { %3660 = dma.done.wait (%p4575_p12), [#allocation9], 544   ;;  %p4576_p5 = pmov %p4573_p2 }
  0xda   : > { %p4577_p7 = pmov %p4573_p2 }
  0xdb   : > { %3662 = vsyncadd (%p4576_p5), [#allocation9], 4294966752 }
  0xdc   : > { %3664 = dma.done.wait (%p4577_p7), [#allocation12], 512   ;;  %p4578_p4 = pmov %p4573_p2 }
  0xdd   : > { %v3699_v0 = vmov 0.0|0.0   ;;  %vm3700_vm0 = vmmov 0   ;;  %v3701_v1 = vmov 0.0   ;;  %v594_v2 = vld [vmem:[%s4514_s2] sm:$0xff]  ;;  %v595_v3 = vld [vmem:[%s4514_s2 + $0x8] sm:$0xff]  ;;  %v596_v4 = vld [vmem:[%s4514_s2 + $0x10] sm:$0xff] }
  0xde   : > { %3666 = vsyncadd (%p4578_p4), [#allocation12], 4294966784  ;;  %3157 = vmatprep.subr.bf16.mxu1 %v3699_v0  ;;  %3000 = vmatprep.mubr.msk.f32.mxu1 %vm3700_vm0, %v3701_v1  ;;  %v3158_v5 = vpack.c.bf16 %v595_v3, %v594_v2  ;;  %v597_v6 = vld [vmem:[%s4514_s2 + $0x18] sm:$0xff]  ;;  %v4093_v8 = vld [vmem:[%s507_s6] sm:$0xff]  ;;  %vm603_vm1 = vcmask 261120   ;;  %s3702_s22 = smov 120  }
  0xdf   : > { %3013 = vmatprep.subr.mxu0 %v3701_v1  ;;  %3015 = vmatprep.mubr.msk.f32.mxu0 %vm3700_vm0, %v3701_v1  ;;  %v3161_v7 = vpack.c.bf16 %v597_v6, %v596_v4  ;;  %s3703_s12 = smov 96   ;;  %s3704_s28 = smov 80   ;;  %vm680_vm2 = vcmask 64512   ;;  %v598_v4 = vld [vmem:[%s4515_s3] sm:$0xff]  ;;  %vm1357_vm3 = vcmask 130048   ;;  %vm1359_vm4 = vcmask 195584  }
  0xe0   : > { %3159 = vmatpush3.bf16.msra.mxu1 %v3158_v5  ;;  %s4545_s27 = smov 88   ;;  %s3706_s6 = smov 72   ;;  %v599_v5 = vld [vmem:[%s4515_s3 + $0x8] sm:$0xff]  ;;  %vm2503_vm5 = vcmask 523264  }
  0xe1   : > { %3160 = vmatprep.subr.bf16.mxu1 %v3699_v0  ;;  %s3707_s23 = smov 112   ;;  %s3708_s11 = smov 104   ;;  %v3164_v6 = vpack.c.bf16 %v599_v5, %v598_v4 }
  0xe2   : > { %s3709_s17 = smov 56   ;;  %s3710_s24 = smov 64  }
  0xe3   : > { %s3711_s7 = smov 48   ;;  %s3712_s14 = smov 40  }
  0xe4   : > { %3162 = vmatpush3.bf16.msra.mxu1 %v3161_v7  ;;  %s4540_s25 = sshll.u32 %s4043_s13, 5  ;;  %s4584_s8 = sld [smem:[#allocation31_spill]] }
  0xe5   : > { %3003 = vmatprep.subr.mxu1 %v3701_v1  ;;  %s4153_s21 = scalar_lea.vmem [#allocation14], %s4540_s25  ;;  %p4587_p3 = scmp.ne.s32.totalorder %s4568_s26, 0 }
  0xe7   : > { %3001 = vmatmul.mubr.msk.f32.vlgmr.msra.gmra.mrb[0].mxu1 %vm603_vm1, %v4093_v8 }
  0xe8   : > { %3005 = vmatprep.mubr.msk.f32.mxu1 %vm3700_vm0, %v3701_v1 }
 0x1ba   : > { %v4100_v9 = vpop.f32.mrb[0].mxu1 }
 0x1bb   : > { %843 = vrot.lane.b32.xlu1 %v4100_v9, %s3702_s22  ;;  %678 = vrot.lane.b32.xlu0 %v4100_v9, %s3703_s12  ;;  %v3002_v10 = vpop.f32.mrb[1].mxu1 }
 0x1bf   : > { %1012 = vrot.lane.b32.xlu1 %v4100_v9, %s3704_s28  ;;  %845 = vrot.lane.b32.xlu0 %v4100_v9, %s4545_s27  ;;  %s4582_s27 = smov 16  }
 0x1c3   : > { %1179 = vrot.lane.b32.xlu1 %v4100_v9, %s3706_s6  ;;  %1010 = vrot.lane.b32.xlu0 %v4100_v9, %s3707_s23 }
 0x1c7   : > { %1177 = vrot.lane.b32.xlu0 %v4100_v9, %s3708_s11 }
 0x22d   : > { %v844_v11 = vpop.permute.xlu1 %843  ;;  %v679_v12 = vpop.permute.xlu0 %678 }
 0x22e   : > { %3004 = vmatpush3.xpose.msk.msra.mxu1 %vm680_vm2, %v679_v12  ;;  %v600_v12 = vld [vmem:[%s4515_s3 + $0x10] sm:$0xff] }
 0x22f   : > { %3008 = vmatprep.subr.mxu1 %v3701_v1 }
 0x231   : > { %3006 = vmatmul.mubr.msk.f32.vlgmr.msra.gmra.mrb[2].mxu1 %vm680_vm2, %v4100_v9  ;;  %v846_v13 = vpop.permute.xlu0 %845  ;;  %v1013_v14 = vpop.permute.xlu1 %1012 }
 0x232   : > { %3014 = vmatpush3.xpose.msk.msra.mxu0 %vm680_vm2, %v846_v13  ;;  %3010 = vmatprep.mubr.msk.f32.mxu1 %vm3700_vm0, %v3701_v1  ;;  %v601_v13 = vld [vmem:[%s4515_s3 + $0x18] sm:$0xff] }
 0x233   : > { %3023 = vmatprep.subr.mxu0 %v3701_v1 }
 0x235   : > { %3016 = vmatmul.mubr.msk.f32.vlgmr.msra.gmra.mrb[0].mxu0 %vm680_vm2, %v844_v11  ;;  %v1011_v15 = vpop.permute.xlu0 %1010  ;;  %v1180_v16 = vpop.permute.xlu1 %1179 }
 0x236   : > { %3024 = vmatpush3.xpose.msk.msra.mxu0 %vm680_vm2, %v1013_v14  ;;  %3025 = vmatprep.mubr.msk.f32.mxu0 %vm3700_vm0, %v3701_v1  ;;  %v3167_v14 = vpack.c.bf16 %v601_v13, %v600_v12 }
 0x237   : > { %3033 = vmatprep.subr.mxu0 %v3701_v1 }
 0x239   : > { %3026 = vmatmul.mubr.msk.f32.vlgmr.msra.gmra.mrb[2].mxu0 %vm680_vm2, %v1011_v15  ;;  %v1178_v17 = vpop.permute.xlu0 %1177 }
 0x23a   : > { %3034 = vmatpush3.xpose.msk.msra.mxu0 %vm680_vm2, %v1180_v16  ;;  %3035 = vmatprep.mubr.msk.f32.mxu0 %vm3700_vm0, %v3701_v1 }
 0x23b   : > { %3163 = vmatprep.subr.bf16.mxu0 %v3699_v0 }
 0x23d   : > { %3036 = vmatmul.mubr.msk.f32.vlgmr.msra.gmra.mrb[4].mxu0 %vm680_vm2, %v1178_v17 }
 0x23e   : > { %3051 = vmatprep.mubr.msk.f32.mxu0 %vm3700_vm0, %v3701_v1  ;;  %3165 = vmatpush3.bf16.msra.mxu0 %v3164_v6 }
 0x23f   : > { %3166 = vmatprep.subr.bf16.mxu0 %v3699_v0 }
 0x242   : > { %3168 = vmatpush3.bf16.msra.mxu0 %v3167_v14 }
 0x243   : > { %3175 = vmatprep.subr.bf16.mxu0 %v3699_v0 }
 0x304   : > { %v751_v18 = vpop.f32.mrb[2].mxu1 }
 0x305   : > { %v3007_v19 = vpop.f32.mrb[3].mxu1  ;;  %v755_v20 = vsel %vm680_vm2, %v751_v18, -inf }
 0x306   : > { %756 = vmax.xlane.f32.xlu1 %v755_v20 }
 0x308   : > { %v917_v21 = vpop.f32.mrb[0].mxu0 }
 0x309   : > { %v3017_v22 = vpop.f32.mrb[1].mxu0  ;;  %v921_v23 = vsel %vm680_vm2, %v917_v21, -inf }
 0x30a   : > { %922 = vmax.xlane.f32.xlu0 %v921_v23 }
 0x30c   : > { %v1084_v24 = vpop.f32.mrb[2].mxu0 }
 0x30d   : > { %v3027_v25 = vpop.f32.mrb[3].mxu0  ;;  %v1088_v26 = vsel %vm680_vm2, %v1084_v24, -inf }
 0x30e   : > { %1089 = vmax.xlane.f32.xlu0 %v1088_v26 }
 0x310   : > { %v1251_v27 = vpop.f32.mrb[4].mxu0 }
 0x311   : > { %v3037_v28 = vpop.f32.mrb[5].mxu0  ;;  %v1255_v29 = vsel %vm680_vm2, %v1251_v27, -inf }
 0x312   : > { %1256 = vmax.xlane.f32.xlu1 %v1255_v29  ;;  %v1458_v29 = vld [vmem:[%s4517_s5] sm:$0xff] }
 0x323   : > { %934 = vrot.lane.b32.xlu1 %v4100_v9, %s3709_s17  ;;  %s2919_s17 = sshll.u32 %s3816_s19, 9 }
 0x393   : > { %v757_v30 = vpop.xlane.xlu1 %756 }
 0x394   : > { %v758_v31 = vsub.f32 %v751_v18, %v757_v30  ;;  %v1459_v30 = vld [vmem:[%s4517_s5 + $0x8] sm:$0xff] }
 0x396   : > { %v759_v32 = vmul.f32 1.442695, %v758_v31  ;;  %v1460_v31 = vld [vmem:[%s4517_s5 + $0x10] sm:$0xff] }
 0x397   : > { %v923_v33 = vpop.xlane.xlu0 %922 }
 0x398   : > { %3337 = vpow2.f32 %v759_v32  ;;  %v924_v34 = vsub.f32 %v917_v21, %v923_v33  ;;  %v3327_v32 = vpack.i.bf16 %v1459_v30, %v1458_v29  ;;  %v3170_v33 = vpack.c.bf16 %v1459_v30, %v1458_v29 }
 0x39a   : > { %v925_v35 = vmul.f32 1.442695, %v924_v34 }
 0x39b   : > { %v1090_v45 = vpop.xlane.xlu0 %1089 }
 0x39c   : > { %3339 = vpow2.f32 %v925_v35  ;;  %v1091_v46 = vsub.f32 %v1084_v24, %v1090_v45 }
 0x39e   : > { %v1092_v47 = vmul.f32 1.442695, %v1091_v46 }
 0x39f   : > { %v1257_v36 = vpop.xlane.xlu1 %1256 }
 0x3a0   : > { %v1258_v37 = vsub.f32 %v1251_v27, %v1257_v36 }
 0x3a2   : > { %v3338_v38 = vpop.eup %3337  ;;  %v1259_v39 = vmul.f32 1.442695, %v1258_v37 }
 0x3a3   : > { %v761_v40 = vsel %vm680_vm2, %v3338_v38, 0.0  ;;  %v935_v50 = vpop.permute.xlu1 %934 }
 0x3a4   : > { %3341 = vpow2.f32 %v1259_v39  ;;  %762 = vadd.xlane.f32.xlu0 %v761_v40 }
 0x3a5   : > { %3343 = vpow2.f32 %v1092_v47  ;;  %v1448_v47 = vlaneseq }
 0x3a6   : > { %v3340_v41 = vpop.eup %3339 }
 0x3a7   : > { %v927_v42 = vsel %vm680_vm2, %v3340_v41, 0.0 }
 0x3a8   : > { %928 = vadd.xlane.f32.xlu1 %v927_v42 }
 0x3ae   : > { %v3342_v43 = vpop.eup %3341 }
 0x3af   : > { %v1261_v44 = vsel %vm680_vm2, %v3342_v43, 0.0  ;;  %v3344_v48 = vpop.eup %3343 }
 0x3b0   : > { %1262 = vadd.xlane.f32.xlu1 %v1261_v44  ;;  %v1094_v49 = vsel %vm680_vm2, %v3344_v48, 0.0 }
 0x3ba   : > { %767 = vrot.lane.b32.xlu0 %v4100_v9, %s3710_s24  ;;  %s4542_s24 = smov 16  }
 0x3c1   : > { %1101 = vrot.lane.b32.xlu1 %v4100_v9, %s3711_s7  ;;  %s4541_s7 = smov 24  }
 0x3d9   : > { %1095 = vadd.xlane.f32.xlu0 %v1094_v49 }
 0x3ef   : > { %1268 = vrot.lane.b32.xlu0 %v4100_v9, %s3712_s14  ;;  %s4543_s14 = smov 8  }
 0x431   : > { %v763_v51 = vpop.xlane.xlu0 %762 }
 0x432   : > { %3345 = vrcp.f32 %v763_v51 }
 0x435   : > { %v768_v52 = vpop.permute.xlu0 %767  ;;  %v929_v53 = vpop.xlane.xlu1 %928 }
 0x436   : > { %3347 = vrcp.f32 %v929_v53  ;;  %3009 = vmatpush3.msra.mxu1 %v768_v52  ;;  %v4221_v52 = vshrl.u32 %v1448_v47, 7 }
 0x437   : > { %3018 = vmatprep.subr.mxu1 %v3701_v1 }
 0x43c   : > { %v3346_v54 = vpop.eup %3345 }
 0x43d   : > { %v765_v55 = vmul.f32 %v3346_v54, %v3338_v38  ;;  %v1263_v56 = vpop.xlane.xlu1 %1262  ;;  %v593_v54 = vld [vmem:[%s516_s4] sm:$0xff]  ;;  %s4579_s4 = smov 88  }
 0x43e   : > { %3349 = vrcp.f32 %v1263_v56  ;;  %v602_v56 = vld [vmem:[#allocation7] sm:$0x3] }
 0x43f   : > { %766 = vst.msk [vmem:[%s4153_s21] sm:$0xff] %vm680_vm2, %v765_v55  ;;  %3011 = vmatmul.mubr.msk.f32.vlgmr.msra.gmra.mrb[4].mxu1 %vm680_vm2, %v765_v55  ;;  %v4226_v55 = vsub.s32 0, %v4221_v52 }
 0x440   : > { %v3348_v57 = vpop.eup %3347  ;;  %3019 = vmatpush3.msra.mxu1 %v935_v50  ;;  %3020 = vmatprep.mubr.msk.f32.mxu1 %vm3700_vm0, %v3701_v1 }
 0x441   : > { %v931_v58 = vmul.f32 %v3348_v57, %v3340_v41  ;;  %v1102_v59 = vpop.permute.xlu1 %1101  ;;  %3028 = vmatprep.subr.mxu1 %v3701_v1  ;;  %v4231_v57 = vsub.s32 1, %v4221_v52 }
 0x443   : > { %2877 = vst.msk [vmem:[%s4153_s21 + $0x8] sm:$0xff] %vm680_vm2, %v931_v58  ;;  %3021 = vmatmul.mubr.msk.f32.vlgmr.msra.gmra.mrb[6].mxu1 %vm680_vm2, %v931_v58  ;;  %v1451_v58 = vrot.slane %v602_v56, %v4226_v55 }
 0x444   : > { %3029 = vmatpush3.msra.mxu1 %v1102_v59  ;;  %3030 = vmatprep.mubr.msk.f32.mxu1 %vm3700_vm0, %v3701_v1 }
 0x445   : > { %3038 = vmatprep.subr.mxu1 %v3701_v1 }
 0x448   : > { %v3350_v60 = vpop.eup %3349 }
 0x449   : > { %v1265_v61 = vmul.f32 %v3350_v60, %v3342_v43 }
 0x44b   : > { %2885 = vst.msk [vmem:[%s4153_s21 + $0x18] sm:$0xff] %vm680_vm2, %v1265_v61 }
 0x466   : > { %v1096_v62 = vpop.xlane.xlu0 %1095 }
 0x467   : > { %3351 = vrcp.f32 %v1096_v62 }
 0x46a   : > { %v1269_v3 = vpop.permute.xlu0 %1268 }
 0x471   : > { %v3352_v63 = vpop.eup %3351 }
 0x472   : > { %v1098_v2 = vmul.f32 %v3352_v63, %v3344_v48 }
 0x474   : > { %2881 = vst.msk [vmem:[%s4153_s21 + $0x10] sm:$0xff] %vm680_vm2, %v1098_v2  ;;  %3031 = vmatmul.mubr.msk.f32.vlgmr.msra.gmra.mrb[8].mxu1 %vm680_vm2, %v1098_v2 }
 0x475   : > { %3039 = vmatpush3.msra.mxu1 %v1269_v3  ;;  %3040 = vmatprep.mubr.msk.f32.mxu1 %vm3700_vm0, %v3701_v1 }
 0x476   : > { %3169 = vmatprep.subr.bf16.mxu1 %v3699_v0 }
 0x478   : > { %3041 = vmatmul.mubr.msk.f32.vlgmr.msra.gmra.mrb[10].mxu1 %vm680_vm2, %v1265_v61  ;;  %v1456_v61 = vrot.slane %v602_v56, %v4231_v57 }
 0x479   : > { %3062 = vmatprep.mubr.msk.f32.mxu1 %vm3700_vm0, %v3701_v1  ;;  %3171 = vmatpush3.bf16.msra.mxu1 %v3170_v33 }
 0x47a   : > { %3172 = vmatprep.subr.bf16.mxu1 %v3699_v0 }
 0x512   : > { %v839_v7 = vpop.f32.mrb[4].mxu1 }
 0x513   : > { %v3012_v9 = vpop.f32.mrb[5].mxu1 }
 0x516   : > { %v1006_v10 = vpop.f32.mrb[6].mxu1 }
 0x517   : > { %1345 = vrot.lane.b32.xlu1 %v1006_v10, %s4543_s14  ;;  %v3022_v11 = vpop.f32.mrb[7].mxu1 }
 0x547   : > { %v1173_v15 = vpop.f32.mrb[8].mxu1 }
 0x548   : > { %1349 = vrot.lane.b32.xlu0 %v1173_v15, %s4542_s24  ;;  %v3032_v16 = vpop.f32.mrb[9].mxu1 }
 0x54b   : > { %v1340_v17 = vpop.f32.mrb[10].mxu1 }
 0x54c   : > { %1353 = vrot.lane.b32.xlu1 %v1340_v17, %s4541_s7  ;;  %v3042_v18 = vpop.f32.mrb[11].mxu1  ;;  %s3716_s7 = smov [#allocation14]  }
 0x54d   : > { %s3551_s20 = sshll.u32 %s3716_s7, 4  ;;  %s3552_s20 = int_to_ptr.vmem [resolvable:$false] %s3551_s20 }
 0x54e   : > { %s3553_s25 = scalar_lea.vmem %s3552_s20, 1024 }
 0x589   : > { %v1346_v19 = vpop.permute.xlu1 %1345 }
 0x58a   : > { %v1356_v21 = vsel %vm680_vm2, %v839_v7, %v1346_v19 }
 0x5ba   : > { %v1350_v20 = vpop.permute.xlu0 %1349 }
 0x5bb   : > { %v1358_v22 = vsel %vm1357_vm3, %v1356_v21, %v1350_v20 }
 0x5be   : > { %v1354_v23 = vpop.permute.xlu1 %1353 }
 0x5bf   : > { %v1360_v24 = vsel %vm1359_vm4, %v1358_v22, %v1354_v23 }
 0x5c0   : > { %3052 = vmatmul.mubr.msk.f32.vlgmr.msra.gmra.mrb[6].mxu0 %vm603_vm1, %v1360_v24 }
 0x5c1   : > { %3073 = vmatprep.mubr.msk.f32.mxu0 %vm3700_vm0, %v3701_v1 }
 0x693   : > { %v1430_v25 = vpop.f32.mrb[6].mxu0 }
 0x694   : > { %v1431_v26 = vadd.f32 %v1430_v25, %v4093_v8  ;;  %v3053_v27 = vpop.f32.mrb[7].mxu0  ;;  %v1461_v8 = vld [vmem:[%s4517_s5 + $0x18] sm:$0xff] }
 0x695   : > { %v3332_v34 = vpack.i.bf16 %v1461_v8, %v1460_v31  ;;  %v3173_v35 = vpack.c.bf16 %v1461_v8, %v1460_v31 }
 0x696   : > { %v1434_v28 = vsel %vm603_vm1, %v1431_v26, 0.0 }
 0x697   : > { %1435 = vadd.xlane.f32.xlu0 %v1434_v28  ;;  %3174 = vmatpush3.bf16.msra.mxu1 %v3173_v35 }
 0x698   : > { %3076 = vmatprep.subr.mxu1 %v3701_v1 }
 0x6ad   : > { %3328 = vrot.lane.b32.xlu0 %v3327_v32, %s3703_s12 }
 0x724   : > { %v1436_v36 = vpop.xlane.xlu0 %1435 }
 0x725   : > { %v1438_v37 = vmul.f32 0.03125, %v1436_v36 }
 0x727   : > { %v1439_v38 = vsub.f32 %v1431_v26, %v1438_v37 }
 0x728   : > { %v3329_v41 = vpop.permute.xlu0 %3328 }
 0x729   : > { %v1440_v39 = vmul.f32 %v1439_v38, %v1439_v38  ;;  %v3331_v42 = vunpack.i.h.bf16 %v3329_v41  ;;  %v3330_v43 = vunpack.i.l.bf16 %v3329_v41 }
 0x72b   : > { %v1441_v40 = vsel %vm603_vm1, %v1440_v39, 0.0  ;;  %v3176_v44 = vpack.c.bf16 %v3331_v42, %v3330_v43 }
 0x72c   : > { %1442 = vadd.xlane.f32.xlu1 %v1441_v40 }
 0x72d   : > { %3177 = vmatpush3.bf16.msra.mxu0 %v3176_v44 }
 0x72e   : > { %3178 = vmatprep.subr.bf16.mxu0 %v3699_v0 }
 0x73d   : > { %3333 = vrot.lane.b32.xlu1 %v3332_v34, %s3703_s12 }
 0x7b9   : > { %v1443_v45 = vpop.xlane.xlu1 %1442 }
 0x7ba   : > { %v1444_v46 = vmul.f32 0.03125, %v1443_v45 }
 0x7bc   : > { %v1445_v48 = vadd.f32 1e-06, %v1444_v46 }
 0x7bd   : > { %v3334_v49 = vpop.permute.xlu1 %3333 }
 0x7be   : > { %3353 = vrsqrt.f32 %v1445_v48  ;;  %v3336_v50 = vunpack.i.h.bf16 %v3334_v49  ;;  %v3335_v51 = vunpack.i.l.bf16 %v3334_v49 }
 0x7c0   : > { %v3179_v53 = vpack.c.bf16 %v3336_v50, %v3335_v51 }
 0x7c2   : > { %3180 = vmatpush3.bf16.msra.mxu0 %v3179_v53 }
 0x7c3   : > { %3086 = vmatprep.subr.mxu0 %v3701_v1 }
 0x7c5   : > { %3074 = vmatmul.mubr.msk.f32.vlgmr.msra.gmra.mrb[8].mxu0 %vm603_vm1, %v593_v54 }
 0x7c6   : > { %3088 = vmatprep.mubr.msk.f32.mxu0 %vm3700_vm0, %v3701_v1 }
 0x7c8   : > { %v3354_v59 = vpop.eup %3353 }
 0x7c9   : > { %v1447_v60 = vmul.f32 %v3354_v59, %v1439_v38 }
 0x7cb   : > { %v1452_v62 = vmul.f32 %v1451_v58, %v1447_v60 }
 0x7cd   : > { %v4237_v63 = vadd.f32 %v1456_v61, %v1452_v62 }
 0x7cf   : > { %3063 = vmatmul.mubr.msk.f32.vlgmr.msra.gmra.mrb[12].mxu1 %vm603_vm1, %v4237_v63 }
 0x7d0   : > { %3078 = vmatprep.mubr.msk.f32.mxu1 %vm3700_vm0, %v3701_v1 }
 0x898   : > { %v4243_v2 = vpop.f32.mrb[8].mxu0 }
 0x899   : > { %1795 = vrot.lane.b32.xlu0 %v4243_v2, %s3702_s22  ;;  %v3075_v3 = vpop.f32.mrb[9].mxu0  ;;  %3077 = vmatpush3.xpose.msk.msra.mxu1 %vm680_vm2, %v4243_v2 }
 0x89a   : > { %3081 = vmatprep.subr.mxu1 %v3701_v1 }
 0x89d   : > { %1962 = vrot.lane.b32.xlu0 %v4243_v2, %s3707_s23 }
 0x8a1   : > { %2129 = vrot.lane.b32.xlu0 %v4243_v2, %s3708_s11 }
 0x8a2   : > { %v1536_v4 = vpop.f32.mrb[12].mxu1 }
 0x8a3   : > { %1793 = vrot.lane.b32.xlu1 %v1536_v4, %s3702_s22  ;;  %v3064_v5 = vpop.f32.mrb[13].mxu1  ;;  %3079 = vmatmul.mubr.msk.f32.vlgmr.msra.gmra.mrb[14].mxu1 %vm680_vm2, %v1536_v4  ;;  %s4580_s22 = sshll.u32 %s4043_s13, 5 }
 0x8a4   : > { %3083 = vmatprep.mubr.msk.f32.mxu1 %vm3700_vm0, %v3701_v1  ;;  %v1463_v5 = vld [vmem:[#allocation8 + $0x8] sm:$0xff] }
 0x8a7   : > { %1960 = vrot.lane.b32.xlu1 %v1536_v4, %s3707_s23  ;;  %s2639_s23 = sshll.u32 %s4153_s21, 4  ;;  %s4389_s23 = int_to_ptr.vmem [resolvable:$true] %s2639_s23 }
 0x8a8   : > { %s3547_s24 = scalar_lea.vmem %s4389_s23, 512  ;;  %p3554_p10 = scmp.lt.s32.totalorder %s4389_s23, %s3552_s20 }
 0x8a9   : > { %p3548_p1 = scmp.ne.s32.totalorder %s4389_s23, %s3547_s24  ;;  %p3555_p11 = scmp.lt.s32.totalorder %s3553_s25, %s3547_s24 }
 0x8ab   : > { %2127 = vrot.lane.b32.xlu1 %v1536_v4, %s3708_s11  ;;  %v1462_v4 = vld [vmem:[#allocation8] sm:$0xff]  ;;  %s4586_s11 = sand.u32 1, %s3816_s19   ;;  %p3549_p13 = pnand %p3548_p1, %p4587_p3 }
 0x8ac   : > { %s4393_s14 = scalar_lea.sflag [#allocation15], %s4586_s11  ;;  %p3556_p9 = por %p3555_p11, %p3554_p10 }
 0x8ad   : > { %p3550_p0 = pneg %p3549_p13 }
 0x8af   : > { %p3557_p6 = pnand %p3556_p9, %p3550_p0 }
 0x90b   : > { %v1796_v6 = vpop.permute.xlu0 %1795 }
 0x90c   : > { %3087 = vmatpush3.xpose.msk.msra.mxu0 %vm680_vm2, %v1796_v6  ;;  %v3182_v6 = vpack.c.bf16 %v1463_v5, %v1462_v4 }
 0x90d   : > { %3096 = vmatprep.subr.mxu0 %v3701_v1 }
 0x90f   : > { %v1963_v7 = vpop.permute.xlu0 %1962 }
 0x913   : > { %v2130_v11 = vpop.permute.xlu0 %2129 }
 0x915   : > { %v1794_v9 = vpop.permute.xlu1 %1793 }
 0x916   : > { %3089 = vmatmul.mubr.msk.f32.vlgmr.msra.gmra.mrb[10].mxu0 %vm680_vm2, %v1794_v9  ;;  %v1465_v9 = vld [vmem:[#allocation8 + $0x18] sm:$0xff] }
 0x917   : > { %3097 = vmatpush3.xpose.msk.msra.mxu0 %vm680_vm2, %v1963_v7  ;;  %3098 = vmatprep.mubr.msk.f32.mxu0 %vm3700_vm0, %v3701_v1  ;;  %v1464_v7 = vld [vmem:[#allocation8 + $0x10] sm:$0xff] }
 0x918   : > { %3106 = vmatprep.subr.mxu0 %v3701_v1 }
 0x919   : > { %v1961_v10 = vpop.permute.xlu1 %1960 }
 0x91a   : > { %3099 = vmatmul.mubr.msk.f32.vlgmr.msra.gmra.mrb[12].mxu0 %vm680_vm2, %v1961_v10  ;;  %v3185_v10 = vpack.c.bf16 %v1465_v9, %v1464_v7 }
 0x91b   : > { %3107 = vmatpush3.xpose.msk.msra.mxu0 %vm680_vm2, %v2130_v11  ;;  %3108 = vmatprep.mubr.msk.f32.mxu0 %vm3700_vm0, %v3701_v1 }
 0x91c   : > { %3181 = vmatprep.subr.bf16.mxu0 %v3699_v0 }
 0x91d   : > { %v2128_v12 = vpop.permute.xlu1 %2127 }
 0x91e   : > { %3109 = vmatmul.mubr.msk.f32.vlgmr.msra.gmra.mrb[14].mxu0 %vm680_vm2, %v2128_v12 }
 0x91f   : > { %3124 = vmatprep.mubr.msk.f32.mxu0 %vm3700_vm0, %v3701_v1  ;;  %3183 = vmatpush3.bf16.msra.mxu0 %v3182_v6 }
 0x920   : > { %3184 = vmatprep.subr.bf16.mxu0 %v3699_v0 }
 0x923   : > { %3186 = vmatpush3.bf16.msra.mxu0 %v3185_v10 }
 0x924   : > { %3193 = vmatprep.subr.bf16.mxu0 %v3699_v0 }
 0x976   : > { %v1701_v13 = vpop.f32.mrb[14].mxu1 }
 0x977   : > { %v3080_v14 = vpop.f32.mrb[15].mxu1  ;;  %v1705_v15 = vsel %vm680_vm2, %v1701_v13, -inf }
 0x978   : > { %1706 = vmax.xlane.f32.xlu0 %v1705_v15 }
 0x9e9   : > { %v1867_v16 = vpop.f32.mrb[10].mxu0 }
 0x9ea   : > { %v3090_v17 = vpop.f32.mrb[11].mxu0  ;;  %v1871_v18 = vsel %vm680_vm2, %v1867_v16, -inf }
 0x9eb   : > { %1872 = vmax.xlane.f32.xlu1 %v1871_v18 }
 0x9ed   : > { %v2034_v19 = vpop.f32.mrb[12].mxu0 }
 0x9ee   : > { %v3100_v20 = vpop.f32.mrb[13].mxu0  ;;  %v2038_v21 = vsel %vm680_vm2, %v2034_v19, -inf }
 0x9ef   : > { %2039 = vmax.xlane.f32.xlu0 %v2038_v21 }
 0x9f1   : > { %v2201_v22 = vpop.f32.mrb[14].mxu0 }
 0x9f2   : > { %v3110_v23 = vpop.f32.mrb[15].mxu0  ;;  %v2205_v24 = vsel %vm680_vm2, %v2201_v22, -inf }
 0x9f3   : > { %2206 = vmax.xlane.f32.xlu0 %v2205_v24 }
 0x9fc   : > { %1717 = vrot.lane.b32.xlu1 %v4243_v2, %s3703_s12  ;;  %s4294_s12 = scalar_lea.vmem [#allocation16], %s4580_s22 }
 0xa05   : > { %v1707_v25 = vpop.xlane.xlu0 %1706 }
 0xa06   : > { %v1708_v26 = vsub.f32 %v1701_v13, %v1707_v25 }
 0xa08   : > { %v1709_v27 = vmul.f32 1.442695, %v1708_v26 }
 0xa0a   : > { %3355 = vpow2.f32 %v1709_v27 }
 0xa14   : > { %v3356_v28 = vpop.eup %3355 }
 0xa15   : > { %v1711_v29 = vsel %vm680_vm2, %v3356_v28, 0.0 }
 0xa20   : > { %1712 = vadd.xlane.f32.xlu1 %v1711_v29 }
 0xa78   : > { %v1873_v30 = vpop.xlane.xlu1 %1872 }
 0xa79   : > { %v1874_v31 = vsub.f32 %v1867_v16, %v1873_v30 }
 0xa7b   : > { %v1875_v32 = vmul.f32 1.442695, %v1874_v31 }
 0xa7c   : > { %v1718_v33 = vpop.permute.xlu1 %1717  ;;  %v2040_v8 = vpop.xlane.xlu0 %2039 }
 0xa7d   : > { %3357 = vpow2.f32 %v1875_v32  ;;  %v2041_v34 = vsub.f32 %v2034_v19, %v2040_v8  ;;  %3082 = vmatpush3.msra.mxu1 %v1718_v33  ;;  %v2405_v32 = vld [vmem:[#allocation11] sm:$0xff]  ;;  %v2406_v33 = vld [vmem:[#allocation11 + $0x8] sm:$0xff] }
 0xa7e   : > { %3091 = vmatprep.subr.mxu1 %v3701_v1  ;;  %v3188_v8 = vpack.c.bf16 %v2406_v33, %v2405_v32 }
 0xa7f   : > { %v2042_v35 = vmul.f32 1.442695, %v2041_v34  ;;  %v2407_v34 = vld [vmem:[#allocation11 + $0x10] sm:$0xff] }
 0xa80   : > { %v2207_v36 = vpop.xlane.xlu0 %2206 }
 0xa81   : > { %3359 = vpow2.f32 %v2042_v35  ;;  %v2208_v37 = vsub.f32 %v2201_v22, %v2207_v36  ;;  %v2410_v35 = vld [vmem:[%s4522_s10] sm:$0xff]  ;;  %v2411_v36 = vld [vmem:[%s4522_s10 + $0x8] sm:$0xff] }
 0xa83   : > { %v2209_v38 = vmul.f32 1.442695, %v2208_v37  ;;  %v2412_v37 = vld [vmem:[%s4522_s10 + $0x10] sm:$0xff] }
 0xa85   : > { %3361 = vpow2.f32 %v2209_v38  ;;  %v3194_v38 = vpack.c.bf16 %v2411_v36, %v2410_v35 }
 0xa87   : > { %v3358_v39 = vpop.eup %3357 }
 0xa88   : > { %v1877_v40 = vsel %vm680_vm2, %v3358_v39, 0.0 }
 0xa89   : > { %1878 = vadd.xlane.f32.xlu0 %v1877_v40 }
 0xa8b   : > { %v3360_v41 = vpop.eup %3359 }
 0xa8c   : > { %v2044_v42 = vsel %vm680_vm2, %v3360_v41, 0.0 }
 0xa8d   : > { %2045 = vadd.xlane.f32.xlu1 %v2044_v42  ;;  %v2415_v42 = vld [vmem:[%s4522_s10 + $0x28] sm:$0xff] }
 0xa8f   : > { %v3362_v43 = vpop.eup %3361 }
 0xa90   : > { %v2211_v44 = vsel %vm680_vm2, %v3362_v43, 0.0 }
 0xa91   : > { %2212 = vadd.xlane.f32.xlu0 %v2211_v44 }
 0xa9e   : > { %2051 = vrot.lane.b32.xlu1 %v4243_v2, %s3704_s28  ;;  %s4581_s28 = smov 8  }
 0xaa2   : > { %2218 = vrot.lane.b32.xlu1 %v4243_v2, %s3706_s6  ;;  %s4583_s6 = smov 24  }
 0xaa7   : > { %1884 = vrot.lane.b32.xlu0 %v4243_v2, %s4579_s4 }
 0xaad   : > { %v1713_v45 = vpop.xlane.xlu1 %1712 }
 0xaae   : > { %3363 = vrcp.f32 %v1713_v45 }
 0xab8   : > { %v3364_v46 = vpop.eup %3363 }
 0xab9   : > { %v1715_v47 = vmul.f32 %v3364_v46, %v3356_v28 }
 0xabb   : > { %1716 = vst.msk [vmem:[%s4294_s12] sm:$0xff] %vm680_vm2, %v1715_v47  ;;  %3084 = vmatmul.mubr.msk.f32.vlgmr.msra.gmra.mrb[16].mxu1 %vm680_vm2, %v1715_v47  ;;  %v1466_v47 = vld [vmem:[#allocation10] sm:$0x3] }
 0xabc   : > { %3093 = vmatprep.mubr.msk.f32.mxu1 %vm3700_vm0, %v3701_v1 }
 0xb16   : > { %v1879_v48 = vpop.xlane.xlu0 %1878 }
 0xb17   : > { %3365 = vrcp.f32 %v1879_v48  ;;  %v2398_v48 = vrot.slane %v1466_v47, %v4226_v55 }
 0xb1a   : > { %v2046_v49 = vpop.xlane.xlu1 %2045 }
 0xb1b   : > { %3367 = vrcp.f32 %v2046_v49 }
 0xb1e   : > { %v2213_v50 = vpop.xlane.xlu0 %2212  ;;  %v2052_v54 = vpop.permute.xlu1 %2051 }
 0xb1f   : > { %3369 = vrcp.f32 %v2213_v50 }
 0xb21   : > { %v3366_v51 = vpop.eup %3365 }
 0xb22   : > { %v1881_v53 = vmul.f32 %v3366_v51, %v3358_v39  ;;  %v1885_v56 = vpop.permute.xlu0 %1884  ;;  %v2219_v60 = vpop.permute.xlu1 %2218  ;;  %v2413_v39 = vld [vmem:[%s4522_s10 + $0x18] sm:$0xff]  ;;  %v2403_v51 = vrot.slane %v1466_v47, %v4231_v57 }
 0xb23   : > { %3092 = vmatpush3.msra.mxu1 %v1885_v56  ;;  %v3197_v40 = vpack.c.bf16 %v2413_v39, %v2412_v37  ;;  %v2416_v56 = vld [vmem:[%s4522_s10 + $0x30] sm:$0xff] }
 0xb24   : > { %2895 = vst.msk [vmem:[%s4294_s12 + $0x8] sm:$0xff] %vm680_vm2, %v1881_v53  ;;  %3094 = vmatmul.mubr.msk.f32.vlgmr.msra.gmra.mrb[18].mxu1 %vm680_vm2, %v1881_v53  ;;  %3101 = vmatprep.subr.mxu1 %v3701_v1 }
 0xb25   : > { %v3368_v58 = vpop.eup %3367  ;;  %3102 = vmatpush3.msra.mxu1 %v2052_v54  ;;  %3103 = vmatprep.mubr.msk.f32.mxu1 %vm3700_vm0, %v3701_v1 }
 0xb26   : > { %v2048_v59 = vmul.f32 %v3368_v58, %v3360_v41  ;;  %3111 = vmatprep.subr.mxu1 %v3701_v1  ;;  %v2414_v41 = vld [vmem:[%s4522_s10 + $0x20] sm:$0xff] }
 0xb28   : > { %2899 = vst.msk [vmem:[%s4294_s12 + $0x10] sm:$0xff] %vm680_vm2, %v2048_v59  ;;  %3104 = vmatmul.mubr.msk.f32.vlgmr.msra.gmra.mrb[20].mxu1 %vm680_vm2, %v2048_v59  ;;  %v2906_v59 = vld [vmem:[%s4521_s9] ss:$0 sm:$0xff] }
 0xb29   : > { %v3370_v61 = vpop.eup %3369  ;;  %3112 = vmatpush3.msra.mxu1 %v2219_v60  ;;  %3113 = vmatprep.mubr.msk.f32.mxu1 %vm3700_vm0, %v3701_v1 }
 0xb2a   : > { %v2215_v62 = vmul.f32 %v3370_v61, %v3362_v43  ;;  %3187 = vmatprep.subr.bf16.mxu1 %v3699_v0  ;;  %v3200_v43 = vpack.c.bf16 %v2415_v42, %v2414_v41 }
 0xb2c   : > { %2903 = vst.msk [vmem:[%s4294_s12 + $0x18] sm:$0xff] %vm680_vm2, %v2215_v62  ;;  %3114 = vmatmul.mubr.msk.f32.vlgmr.msra.gmra.mrb[22].mxu1 %vm680_vm2, %v2215_v62 }
 0xb2d   : > { %3135 = vmatprep.mubr.msk.f32.mxu1 %vm3700_vm0, %v3701_v1  ;;  %3189 = vmatpush3.bf16.msra.mxu1 %v3188_v8 }
 0xb2e   : > { %3190 = vmatprep.subr.bf16.mxu1 %v3699_v0 }
 0xb8e   : > { %v1789_v2 = vpop.f32.mrb[16].mxu1 }
 0xb8f   : > { %v3085_v3 = vpop.f32.mrb[17].mxu1 }
 0xb90   : > { %v4370_v3 = vld [vmem:[%s4584_s8] sm:$0x7] }
 0xb91   : > { %v2502_v4 = vrot.slane %v4370_v3, %v4226_v55 }
 0xbf7   : > { %v1956_v11 = vpop.f32.mrb[18].mxu1 }
 0xbf8   : > { %2295 = vrot.lane.b32.xlu0 %v1956_v11, %s4581_s28  ;;  %v3095_v12 = vpop.f32.mrb[19].mxu1 }
 0xbfb   : > { %v2123_v13 = vpop.f32.mrb[20].mxu1 }
 0xbfc   : > { %2299 = vrot.lane.b32.xlu1 %v2123_v13, %s4582_s27  ;;  %v3105_v14 = vpop.f32.mrb[21].mxu1  ;;  %s4585_s27 = sld [smem:[#allocation33_spill]] }
 0xbff   : > { %v2290_v15 = vpop.f32.mrb[22].mxu1 }
 0xc00   : > { %2303 = vrot.lane.b32.xlu0 %v2290_v15, %s4583_s6  ;;  %v3115_v16 = vpop.f32.mrb[23].mxu1 }
 0xc02   : > { %s4386_s6 = scalar_lea.hbm %s4585_s27, %s2919_s17 }
 0xc6a   : > { %v2296_v17 = vpop.permute.xlu0 %2295 }
 0xc6b   : > { %v2306_v19 = vsel %vm680_vm2, %v1789_v2, %v2296_v17 }
 0xc6e   : > { %v2300_v18 = vpop.permute.xlu1 %2299 }
 0xc6f   : > { %v2307_v20 = vsel %vm1357_vm3, %v2306_v19, %v2300_v18 }
 0xc72   : > { %v2304_v21 = vpop.permute.xlu0 %2303 }
 0xc73   : > { %v2308_v22 = vsel %vm1359_vm4, %v2307_v20, %v2304_v21 }
 0xc74   : > { %3125 = vmatmul.mubr.msk.f32.vlgmr.msra.gmra.mrb[16].mxu0 %vm603_vm1, %v2308_v22 }
 0xc75   : > { %3154 = vmatprep.mubr.msk.f32.mxu0 %vm3700_vm0, %v3701_v1  ;;  %v2408_v1 = vld [vmem:[#allocation11 + $0x18] sm:$0xff]  ;;  %3195 = vmatpush3.bf16.msra.mxu0 %v3194_v38 }
 0xc76   : > { %3196 = vmatprep.subr.bf16.mxu0 %v3699_v0 }
 0xc79   : > { %3198 = vmatpush3.bf16.msra.mxu0 %v3197_v40 }
 0xc7a   : > { %3199 = vmatprep.subr.bf16.mxu0 %v3699_v0 }
 0xc7d   : > { %3201 = vmatpush3.bf16.msra.mxu0 %v3200_v43 }
 0xc7e   : > { %3202 = vmatprep.subr.bf16.mxu0 %v3699_v0  ;;  %v2417_v0 = vld [vmem:[%s4522_s10 + $0x38] sm:$0xff] }
 0xc7f   : > { %v3203_v58 = vpack.c.bf16 %v2417_v0, %v2416_v56 }
 0xc81   : > { %3204 = vmatpush3.bf16.msra.mxu0 %v3203_v58 }
 0xd47   : > { %v2378_v23 = vpop.f32.mrb[16].mxu0 }
 0xd48   : > { %v2379_v24 = vadd.f32 %v2378_v23, %v4237_v63  ;;  %v3126_v25 = vpop.f32.mrb[17].mxu0  ;;  %v3191_v63 = vpack.c.bf16 %v2408_v1, %v2407_v34 }
 0xd4a   : > { %v2382_v26 = vsel %vm603_vm1, %v2379_v24, 0.0  ;;  %3192 = vmatpush3.bf16.msra.mxu1 %v3191_v63 }
 0xd4b   : > { %2383 = vadd.xlane.f32.xlu1 %v2382_v26 }
 0xdd8   : > { %v2384_v27 = vpop.xlane.xlu1 %2383 }
 0xdd9   : > { %v2385_v28 = vmul.f32 0.03125, %v2384_v27 }
 0xddb   : > { %v2386_v29 = vsub.f32 %v2379_v24, %v2385_v28 }
 0xddd   : > { %v2387_v30 = vmul.f32 %v2386_v29, %v2386_v29 }
 0xddf   : > { %v2388_v31 = vsel %vm603_vm1, %v2387_v30, 0.0 }
 0xde0   : > { %2389 = vadd.xlane.f32.xlu0 %v2388_v31 }
 0xe6d   : > { %v2390_v44 = vpop.xlane.xlu0 %2389 }
 0xe6e   : > { %v2391_v45 = vmul.f32 0.03125, %v2390_v44 }
 0xe70   : > { %v2392_v46 = vadd.f32 1e-06, %v2391_v45 }
 0xe72   : > { %3371 = vrsqrt.f32 %v2392_v46 }
 0xe7c   : > { %v3372_v49 = vpop.eup %3371 }
 0xe7d   : > { %v2394_v50 = vmul.f32 %v3372_v49, %v2386_v29 }
 0xe7f   : > { %v2399_v53 = vmul.f32 %v2398_v48, %v2394_v50 }
 0xe81   : > { %v2404_v54 = vadd.f32 %v2403_v51, %v2399_v53 }
 0xe83   : > { %3136 = vmatmul.mubr.msk.f32.vlgmr.msra.gmra.mrb[24].mxu1 %vm603_vm1, %v2404_v54 }
 0xf56   : > { %v2494_v60 = vpop.f32.mrb[24].mxu1 }
 0xf57   : > { %v2495_v61 = vadd.f32 %v2906_v59, %v2494_v60  ;;  %v3137_v62 = vpop.f32.mrb[25].mxu1 }
 0xf59   : > { %v2498_v2 = vmax.f32 %v2495_v61, 0.0 }
 0xf5b   : > { %3155 = vmatmul.mubr.msk.f32.vlgmr.msra.gmra.mrb[18].mxu0 %vm2503_vm5, %v2498_v2 }
0x102e   : > { %v2573_v5 = vpop.f32.mrb[18].mxu0 }
0x102f   : > { %v2574_v6 = vadd.f32 %v2573_v5, %v2502_v4  ;;  %v3156_v7 = vpop.f32.mrb[19].mxu0 }
0x1031   : > { %v2577_v9 = vadd.f32 %v2574_v6, %v2404_v54 }
0x1033   : > { %v2578_v10 = vsel %vm603_vm1, %v2577_v9, 0.0 }
0x1034   : > { %2579 = vadd.xlane.f32.xlu0 %v2578_v10 }
0x10c1   : > { %v2580_v11 = vpop.xlane.xlu0 %2579 }
0x10c2   : > { %v2581_v12 = vmul.f32 0.03125, %v2580_v11 }
0x10c4   : > { %v4375_v13 = vsub.f32 %v2577_v9, %v2581_v12 }
0x10c6   : > { %v2583_v14 = vmul.f32 %v4375_v13, %v4375_v13 }
0x10c8   : > { %v2584_v15 = vsel %vm603_vm1, %v2583_v14, 0.0 }
0x10c9   : > { %2585 = vadd.xlane.f32.xlu1 %v2584_v15 }
0x10ca   : > { %3560 = shalt.err (!%p3557_p6)
}
0x10cb   : > { %s3561_s21 = scalar_lea.hbm %s4386_s6, 512  ;;  %s3565_s22 = scalar_lea.hbm %s4585_s27, 1024 }
0x10cc   : > { %p3562_p2 = scmp.ne.s32.totalorder %s4386_s6, %s3561_s21  ;;  %p3566_p5 = scmp.lt.u32.totalorder %s4386_s6, %s4585_s27 }
0x10cd   : > { %p3567_p7 = scmp.lt.u32.totalorder %s3565_s22, %s3561_s21  ;;  %p3569_p1 = scmp.lt.u32.totalorder %s3561_s21, %s4386_s6 }
0x10ce   : > { %p3563_p8 = pnand %p3562_p2, %p4587_p3 }
0x10cf   : > { %p3568_p4 = por %p3567_p7, %p3566_p5 }
0x10d0   : > { %p3564_p12 = pneg %p3563_p8 }
0x10d1   : > { %p3570_p13 = por %p3569_p1, %p3568_p4 }
0x10d3   : > { %p3571_p0 = pnand %p3570_p13, %p3564_p12 }
0x10d5   : > { %3574 = shalt.err (!%p3571_p0)
}
0x10d6   : > { %s3717_s24 = smov 128   ;;  %s4588_s21 = sld [smem:[#allocation34_spill]] }
0x10d7   : > { %3226 = dma.vmem_to_hbm [thread:$0]  (%p4587_p3), %s4389_s23, 512, %s4386_s6, %s4393_s14, %s3717_s24, %s3717_s24, %s4581_s28  }
0x10d8   : > { %s2655_s4 = sshll.u32 %s4294_s12, 4  ;;  %s3718_s11 = smov [#allocation16]   ;;  %s4428_s4 = int_to_ptr.vmem [resolvable:$true] %s2655_s4 }
0x10d9   : > { %s3575_s22 = scalar_lea.vmem %s4428_s4, 512  ;;  %s3579_s7 = sshll.u32 %s3718_s11, 4  ;;  %s3580_s7 = int_to_ptr.vmem [resolvable:$false] %s3579_s7 }
0x10da   : > { %p3576_p10 = scmp.ne.s32.totalorder %s4428_s4, %s3575_s22  ;;  %s3581_s6 = scalar_lea.vmem %s3580_s7, 1024 }
0x10db   : > { %p3582_p6 = scmp.lt.s32.totalorder %s4428_s4, %s3580_s7  ;;  %p3583_p2 = scmp.lt.s32.totalorder %s3581_s6, %s3575_s22 }
0x10dc   : > { %s4425_s8 = scalar_lea.hbm %s4588_s21, %s2919_s17  ;;  %p3577_p11 = pnand %p3576_p10, %p4587_p3 }
0x10dd   : > { %p3584_p8 = por %p3583_p2, %p3582_p6 }
0x10de   : > { %p3578_p9 = pneg %p3577_p11 }
0x10e0   : > { %p3585_p12 = pnand %p3584_p8, %p3578_p9 }
0x10e2   : > { %3588 = shalt.err (!%p3585_p12)
}
0x10e3   : > { %s3589_s12 = scalar_lea.hbm %s4425_s8, 512  ;;  %s3593_s20 = scalar_lea.hbm %s4588_s21, 1024 }
0x10e4   : > { %p3590_p5 = scmp.ne.s32.totalorder %s4425_s8, %s3589_s12  ;;  %p3594_p1 = scmp.lt.u32.totalorder %s4425_s8, %s4588_s21 }
0x10e5   : > { %p3595_p13 = scmp.lt.u32.totalorder %s3593_s20, %s3589_s12  ;;  %p3597_p10 = scmp.lt.u32.totalorder %s3589_s12, %s4425_s8 }
0x10e6   : > { %p3591_p7 = pnand %p3590_p5, %p4587_p3 }
0x10e7   : > { %p3596_p0 = por %p3595_p13, %p3594_p1 }
0x10e8   : > { %p3592_p4 = pneg %p3591_p7 }
0x10e9   : > { %p3598_p11 = por %p3597_p10, %p3596_p0 }
0x10eb   : > { %p3599_p9 = pnand %p3598_p11, %p3592_p4 }
0x10ed   : > { %3602 = shalt.err (!%p3599_p9)
}
0x10ee   : > { %3227 = dma.vmem_to_hbm [thread:$0]  (%p4587_p3), %s4428_s4, 512, %s4425_s8, %s4393_s14, %s3717_s24, %s3717_s24, %s4581_s28   ;;  %v2598_v18 = vsub.s32 2, %v4221_v52  ;;  %v2594_v19 = vrot.slane %v4370_v3, %v4231_v57 }
0x10ef   : > { %s2912_s22 = sshll.u32 %s3816_s19, 7  ;;  %s577_s7 = scalar_lea.vmem [#allocation13], %s4046_s15 }
0x10f0   : > { %v2599_v21 = vrot.slane %v4370_v3, %v2598_v18  ;;  %s2626_s6 = sshll.u32 %s577_s7, 4  ;;  %s4589_s24 = sld [smem:[#allocation32_spill]]  ;;  %s4467_s6 = int_to_ptr.vmem [resolvable:$true] %s2626_s6 }
0x10f1   : > { %s2603_s4 = scalar_lea.sflag [#allocation4], %s4043_s13  ;;  %s3603_s12 = scalar_lea.vmem %s4467_s6, 128 }
0x10f2   : > { %p3604_p6 = scmp.ne.s32.totalorder %s4467_s6, %s3603_s12  ;;  %s3719_s19 = smov [#allocation13]  }
0x10f3   : > { %s3607_s15 = sshll.u32 %s3719_s19, 4  ;;  %s3608_s15 = int_to_ptr.vmem [resolvable:$false] %s3607_s15 }
0x10f4   : > { %p3605_p2 = pnand %p3604_p6, %p4587_p3  ;;  %s3609_s17 = scalar_lea.vmem %s3608_s15, 256 }
0x10f5   : > { %p3610_p12 = scmp.lt.s32.totalorder %s4467_s6, %s3608_s15  ;;  %p3611_p5 = scmp.lt.s32.totalorder %s3609_s17, %s3603_s12 }
0x10f6   : > { %s4465_s8 = scalar_lea.hbm %s4589_s24, %s2912_s22  ;;  %p3606_p8 = pneg %p3605_p2 }
0x10f7   : > { %p3612_p7 = por %p3611_p5, %p3610_p12 }
0x10f9   : > { %p3613_p4 = pnand %p3612_p7, %p3606_p8 }
0x1156   : > { %v2586_v55 = vpop.xlane.xlu1 %2585 }
0x1157   : > { %v2587_v16 = vmul.f32 0.03125, %v2586_v55 }
0x1159   : > { %v2588_v17 = vadd.f32 1e-06, %v2587_v16 }
0x115b   : > { %3373 = vrsqrt.f32 %v2588_v17 }
0x1165   : > { %v3374_v20 = vpop.eup %3373 }
0x1166   : > { %v2590_v22 = vmul.f32 %v3374_v20, %v4375_v13 }
0x1168   : > { %v2595_v23 = vmul.f32 %v2594_v19, %v2590_v22 }
0x116a   : > { %v2600_v24 = vadd.f32 %v2599_v21, %v2595_v23 }
0x116c   : > { %2601 = vst.msk [vmem:[%s577_s7] sm:$0xff] %vm603_vm1, %v2600_v24 }
0x116d   : > { %3616 = shalt.err (!%p3613_p4)
}
0x116e   : > { %s3617_s13 = scalar_lea.hbm %s4465_s8, 128  ;;  %s3621_s25 = scalar_lea.hbm %s4589_s24, 256 }
0x116f   : > { %p3618_p1 = scmp.ne.s32.totalorder %s4465_s8, %s3617_s13  ;;  %p3622_p10 = scmp.lt.u32.totalorder %s4465_s8, %s4589_s24 }
0x1170   : > { %p3623_p11 = scmp.lt.u32.totalorder %s3621_s25, %s3617_s13  ;;  %p3625_p6 = scmp.lt.u32.totalorder %s3617_s13, %s4465_s8 }
0x1171   : > { %p3619_p13 = pnand %p3618_p1, %p4587_p3 }
0x1172   : > { %p3624_p9 = por %p3623_p11, %p3622_p10 }
0x1173   : > { %p3620_p0 = pneg %p3619_p13 }
0x1174   : > { %p3626_p2 = por %p3625_p6, %p3624_p9 }
0x1176   : > { %p3627_p8 = pnand %p3626_p2, %p3620_p0 }
0x1178   : > { %3630 = shalt.err (!%p3627_p8)
}
0x1179   : > { %3225 = dma.vmem_to_hbm [thread:$0]  (%p4587_p3), %s4467_s6, 128, %s4465_s8, %s2603_s4  }
0x117a PF: > { %s2670_s7 = sand.u32 1, %s3677_s29   ;;  %p4590_p12 = scmp.ne.s32.totalorder %s4569_s18, 0 }
0x117b   : > { %p4591_p5 = scmp.ge.s32.totalorder %s3689_s16, 2  ;;  %s2671_s28 = scalar_lea.sflag [#allocation4], %s2670_s7 }
0x117d   : > { %p3252_p7 = pnand %p4591_p5, %p4590_p12 }
0x117f   : > { %3668 = dma.done.wait (!%p3252_p7), %s2671_s28, 128  }
0x1180   : > { %3670 = vsyncadd (!%p3252_p7), %s2671_s28, 4294967168  ;;  %s4592_s14 = sadd.s32 4294967294, %s3689_s16  }
0x1181   : > { %s2679_s12 = sand.u32 1, %s4592_s14  }
0x1182   : > { %s2680_s19 = scalar_lea.sflag [#allocation15], %s2679_s12 }
0x1183   : > { %3672 = dma.done.wait (!%p3252_p7), %s2680_s19, 1024  }
0x1184   : > { %3674 = vsyncadd (!%p3252_p7), %s2680_s19, 4294966272  ;;  %s4593_s16 = sld [smem:[#allocation25_spill]]  ;;  %s4594_s26 = sld [smem:[#allocation24_spill]] }
0x1185   : > { %s4595_s15 = sld [smem:[#allocation26_spill]]  ;;  %s4596_s29 = smov %s3681_s30 }
0x118a   : > { %p36_p3 = scmp.ge.s32.totalorder %s4593_s16, 4   ;;  %s4597_s30 = smov %s4594_s26 }
0x118c   :  { %38 = sbr.rel (!%p36_p3) target bundleno = 20 (0x14), region = 180 }
0x1193   :  { %2694 = vsyncpa [#allocation3], 1 }
0x1194   :  { %2696 = vsyncpa [#allocation3 + $0x1], 1 }
0x1195   :  { %2697 = vsyncpa [#allocation6], 1 }
0x1196   :  { %2699 = vsyncpa [#allocation6 + $0x1], 1 }
0x1197   :  { %2700 = vsyncpa [#allocation9], 1 }
0x1198   :  { %2701 = vsyncpa [#allocation12], 1 }
0x1199   :  { %2702 = vsyncpa [#allocation4], 1 }
0x119a   :  { %2704 = vsyncpa [#allocation4 + $0x1], 1 }
0x119b   :  { %2705 = vsyncpa [#allocation15], 1 }
0x119c   :  { %2707 = vsyncpa [#allocation15 + $0x1], 1 }

</bundles_post_ra>
